<compile_context>
chip_gen: v7x
topology: tpu7x:2x2x1
jax: 0.10.0
libtpu: 0.0.40
codegen_flags: <defaults>
</compile_context>

<pallas_src>
import functools

import numpy as np

import jax
import jax.numpy as jnp
from jax.experimental import pallas as pl
from jax.experimental.pallas import tpu as pltpu

LANE = 128
_VMEM_LIMIT = 32 * 1024 * 1024        # safe on v5e/v6e (128 MiB) and v7x (64 MiB)
_FUSED_VMEM_BYTES = 16 * 1024 * 1024  # single-block fused-conv threshold
_MXU_DTYPE = jnp.bfloat16             # MXU operands only; f32 restores parity


def _rup(x, m):
    return (x + m - 1) // m * m


def _cdiv(a, b):
    return -(-a // b)


# ----------------------------------------------------------------------------
# Conv kernels: matmul (im2col patches) + train-mode BatchNorm + ReLU
# ----------------------------------------------------------------------------
def _conv_fused_kernel(p_ref, w_ref, gamma_ref, beta_ref, o_ref):
    """Single-invocation fused conv: matmul + batch stats + BN + ReLU."""
    r = p_ref.shape[0]                                     # true row count
    y = jnp.dot(p_ref[...], w_ref[...], preferred_element_type=jnp.float32)
    s = jnp.sum(y, axis=0, keepdims=True)                  # [1, Cp]
    ss = jnp.sum(y * y, axis=0, keepdims=True)
    mean = s * (1.0 / r)
    var = jnp.maximum(ss * (1.0 / r) - mean * mean, 0.0)   # biased variance
    inv = jax.lax.rsqrt(var + 1e-5)
    scale = gamma_ref[...] * inv
    shift = beta_ref[...] - mean * scale
    o_ref[...] = jnp.maximum(y * scale + shift, 0.0)


def _make_conv_stats_kernel(r_real, tile_r, emit_y):
    def kernel(p_ref, w_ref, s_ref, ss_ref, *y_ref):
        y = jnp.dot(p_ref[...], w_ref[...], preferred_element_type=jnp.float32)
        # Mask the ragged last tile (no explicit row padding of patches).
        row = (pl.program_id(0) * tile_r
               + jax.lax.broadcasted_iota(jnp.int32, y.shape, 0))
        ym = jnp.where(row < r_real, y, 0.0)
        s_ref[...] = jnp.sum(ym, axis=0).reshape(1, 1, -1)
        ss_ref[...] = jnp.sum(ym * ym, axis=0).reshape(1, 1, -1)
        if emit_y:                                         # cache y when K >= Cp
            y_ref[0][...] = y
    return kernel


def _conv_norm_cached_kernel(y_ref, scale_ref, shift_ref, o_ref):
    o_ref[...] = jnp.maximum(y_ref[...] * scale_ref[...] + shift_ref[...], 0.0)


def _conv_norm_recompute_kernel(p_ref, w_ref, scale_ref, shift_ref, o_ref):
    y = jnp.dot(p_ref[...], w_ref[...], preferred_element_type=jnp.float32)
    o_ref[...] = jnp.maximum(y * scale_ref[...] + shift_ref[...], 0.0)


def conv_bn_relu(patches, w_pack, gamma, beta):
    """[R, K] @ [K, Cp] + train-mode BN (batch stats) + ReLU -> f32 [R, Cp].

    gamma/beta are (1, Cp); conv bias dropped (cancelled by train-mode BN).
    """
    R, K = patches.shape
    Cp = w_pack.shape[1]

    # Fused single-call path whenever everything fits in VMEM (n_tiles == 1):
    # biggest wall-clock lever at small/medium R (no XLA glue between passes,
    # no duplicated matmul, one pallas_call per layer).
    est = (R * K * patches.dtype.itemsize + K * Cp * w_pack.dtype.itemsize
           + 2 * R * Cp * 4)
    if est <= _FUSED_VMEM_BYTES:
        vmem = pl.BlockSpec(memory_space=pltpu.MemorySpace.VMEM)
        return pl.pallas_call(
            _conv_fused_kernel,
            out_shape=jax.ShapeDtypeStruct((R, Cp), jnp.float32),
            in_specs=[vmem, vmem, vmem, vmem],
            out_specs=vmem,
            compiler_params=pltpu.CompilerParams(vmem_limit_bytes=_VMEM_LIMIT),
        )(patches, w_pack, gamma, beta)

    # ---- Tiled two-pass fallback (long mel sequences) ----
    tile_r = min(2048, _rup(R, 8))       # big tiles amortize ~0.35us/grid step
    n_tiles = _cdiv(R, tile_r)           # ragged last tile masked in-kernel
    cparams = pltpu.CompilerParams(dimension_semantics=("parallel",),
                                   vmem_limit_bytes=_VMEM_LIMIT)
    cache_y = K >= Cp                    # recompute only when it is cheaper
    stats_kernel = _make_conv_stats_kernel(R, tile_r, cache_y)
    out_shapes = [jax.ShapeDtypeStruct((n_tiles, 1, Cp), jnp.float32),
                  jax.ShapeDtypeStruct((n_tiles, 1, Cp), jnp.float32)]
    out_specs = [pl.BlockSpec((1, 1, Cp), lambda i: (i, 0, 0)),
                 pl.BlockSpec((1, 1, Cp), lambda i: (i, 0, 0))]
    if cache_y:
        out_shapes.append(jax.ShapeDtypeStruct((R, Cp), jnp.float32))
        out_specs.append(pl.BlockSpec((tile_r, Cp), lambda i: (i, 0)))

    res = pl.pallas_call(
        stats_kernel,
        out_shape=tuple(out_shapes),
        grid_spec=pltpu.PrefetchScalarGridSpec(
            num_scalar_prefetch=0, grid=(n_tiles,),
            in_specs=[pl.BlockSpec((tile_r, K), lambda i: (i, 0)),
                      pl.BlockSpec((K, Cp), lambda i: (0, 0))],
            out_specs=tuple(out_specs)),
        compiler_params=cparams,
    )(patches, w_pack)

    # Tiny per-channel BN folding (XLA glue on [Cp]-sized vectors only).
    mean = jnp.sum(res[0][:, 0, :], axis=0) / R
    var = jnp.maximum(jnp.sum(res[1][:, 0, :], axis=0) / R - mean * mean, 0.0)
    inv = jax.lax.rsqrt(var + 1e-5)
    scale = (gamma[0] * inv).reshape(1, Cp)
    shift = (beta[0] - mean * gamma[0] * inv).reshape(1, Cp)

    if cache_y:
        return pl.pallas_call(
            _conv_norm_cached_kernel,
            out_shape=jax.ShapeDtypeStruct((R, Cp), jnp.float32),
            grid_spec=pltpu.PrefetchScalarGridSpec(
                num_scalar_prefetch=0, grid=(n_tiles,),
                in_specs=[pl.BlockSpec((tile_r, Cp), lambda i: (i, 0)),
                          pl.BlockSpec((1, Cp), lambda i: (0, 0)),
                          pl.BlockSpec((1, Cp), lambda i: (0, 0))],
                out_specs=pl.BlockSpec((tile_r, Cp), lambda i: (i, 0))),
            compiler_params=cparams,
        )(res[2], scale, shift)

    return pl.pallas_call(
        _conv_norm_recompute_kernel,
        out_shape=jax.ShapeDtypeStruct((R, Cp), jnp.float32),
        grid_spec=pltpu.PrefetchScalarGridSpec(
            num_scalar_prefetch=0, grid=(n_tiles,),
            in_specs=[pl.BlockSpec((tile_r, K), lambda i: (i, 0)),
                      pl.BlockSpec((K, Cp), lambda i: (0, 0)),
                      pl.BlockSpec((1, Cp), lambda i: (0, 0)),
                      pl.BlockSpec((1, Cp), lambda i: (0, 0))],
            out_specs=pl.BlockSpec((tile_r, Cp), lambda i: (i, 0))),
        compiler_params=cparams,
    )(patches, w_pack, scale, shift)


# ----------------------------------------------------------------------------
# GRU + fused VAE head kernel (batch-parallel grid, T-chunked scratch)
# ----------------------------------------------------------------------------
def _make_gru_head_kernel(T, Tc, nb, Hp, unroll):
    exact = (T % Tc == 0)

    def kernel(x_ref, wi_ref, wh_ref, bi_ref, bh_ref,
               w1_ref, b1_ref, w2_ref, b2_ref, w3_ref, b3_ref, eps_ref,
               style_ref, mu_ref, logvar_ref, z_ref, gi_scr, h_scr):
        c = pl.program_id(1)

        @pl.when(c == 0)
        def _():
            h_scr[...] = jnp.zeros_like(h_scr)            # PyTorch GRU h0 = 0

        # Hoisted input-side matmul for THIS T-chunk only: one MXU-shaped dot
        # (bf16 operands, f32 accumulation) into a bounded VMEM scratch.
        gi_scr[...] = (jnp.dot(x_ref[0], wi_ref[...],
                               preferred_element_type=jnp.float32)
                       + bi_ref[...])                     # [Tc*nb, 3*Hp]

        t0 = c * Tc

        def step(j, h):
            base = pl.multiple_of(j * nb, nb)
            gi = gi_scr[pl.ds(base, nb), :]               # [nb, 3*Hp]
            # TODO(synk): hold wh_ref in the MXU across the serial steps via
            # pltpu.matmul_push_rhs / matmul_acc_lhs / matmul_pop.
            gh = (jnp.dot(h, wh_ref[...], preferred_element_type=jnp.float32)
                  + bh_ref[...])
            r = jax.nn.sigmoid(gi[:, 0:Hp] + gh[:, 0:Hp])
            zg = jax.nn.sigmoid(gi[:, Hp:2 * Hp] + gh[:, Hp:2 * Hp])
            n = jnp.tanh(gi[:, 2 * Hp:3 * Hp] + r * gh[:, 2 * Hp:3 * Hp])
            h_new = (1.0 - zg) * n + zg * h
            if exact:
                return h_new
            return jnp.where(t0 + j < T, h_new, h)        # mask padded steps

        h_scr[...] = jax.lax.fori_loop(0, Tc, step, h_scr[...], unroll=unroll)

        # Fused VAE head (fc1 / fc2 / reparameterize / fc3), last chunk only.
        @pl.when(c == pl.num_programs(1) - 1)
        def _():
            h = h_scr[...]
            mu = (jnp.dot(h, w1_ref[...], preferred_element_type=jnp.float32)
                  + b1_ref[...])
            logvar = (jnp.dot(h, w2_ref[...], preferred_element_type=jnp.float32)
                      + b2_ref[...])
            z = mu + eps_ref[...] * jnp.exp(0.5 * logvar)
            style_ref[...] = (jnp.dot(z, w3_ref[...],
                                      preferred_element_type=jnp.float32)
                              + b3_ref[...])
            mu_ref[...] = mu
            logvar_ref[...] = logvar
            z_ref[...] = z

    return kernel


def gru_vae_head(seq, packed, eps):
    """seq [N, T, D_k] (feature order (w, c_padded)) -> padded outputs."""
    N, T, D = seq.shape
    assert D == packed["D_k"]
    Hp, Zp, Ep = packed["Hp"], packed["Zp"], packed["Ep"]

    nb = 8                                   # batch rows per grid block
    n_bblk = _cdiv(max(N, 1), nb)            # "parallel" axis -> v7x 2nd TC
    Np = n_bblk * nb
    Tc = T if T <= 128 else 128              # bounds gi scratch (v7x 64 MiB VMEM)
    n_chunks = _cdiv(T, Tc)
    T_pad = n_chunks * Tc

    xb = seq.astype(_MXU_DTYPE)
    xb = jnp.pad(xb, ((0, Np - N), (0, T_pad - T), (0, 0)))
    # [n_bblk, T_pad*nb, D]: rows ordered (t, n_local) inside each batch block.
    # TODO(synk): this time-major permute is the one remaining XLA relayout;
    # it could move in-kernel via a strided pl.ds read of a batch-major gi.
    xb = (xb.reshape(n_bblk, nb, T_pad, D)
            .transpose(0, 2, 1, 3)
            .reshape(n_bblk, T_pad * nb, D))
    eps_pad = jnp.pad(eps, ((0, Np - N), (0, Zp - eps.shape[1])))

    unroll = True if Tc <= 32 else 8
    kernel = _make_gru_head_kernel(T, Tc, nb, Hp, unroll)

    def _w(a):                               # full-array weight block
        return pl.BlockSpec(a.shape, lambda b, c: (0, 0))

    args = (xb, packed["wi_cat"], packed["wh_cat"], packed["bi_cat"],
            packed["bh_cat"], packed["w1"], packed["b1"], packed["w2"],
            packed["b2"], packed["w3"], packed["b3"], eps_pad)
    in_specs = ([pl.BlockSpec((1, Tc * nb, D), lambda b, c: (b, c, 0))]
                + [_w(a) for a in args[1:11]]
                + [pl.BlockSpec((nb, Zp), lambda b, c: (b, 0))])
    out_specs = [pl.BlockSpec((nb, Ep), lambda b, c: (b, 0)),
                 pl.BlockSpec((nb, Zp), lambda b, c: (b, 0)),
                 pl.BlockSpec((nb, Zp), lambda b, c: (b, 0)),
                 pl.BlockSpec((nb, Zp), lambda b, c: (b, 0))]

    return pl.pallas_call(
        kernel,
        out_shape=(jax.ShapeDtypeStruct((Np, Ep), jnp.float32),
                   jax.ShapeDtypeStruct((Np, Zp), jnp.float32),
                   jax.ShapeDtypeStruct((Np, Zp), jnp.float32),
                   jax.ShapeDtypeStruct((Np, Zp), jnp.float32)),
        grid_spec=pltpu.PrefetchScalarGridSpec(
            num_scalar_prefetch=0,
            grid=(n_bblk, n_chunks),
            in_specs=in_specs,
            out_specs=out_specs,
            scratch_shapes=[pltpu.VMEM((Tc * nb, 3 * Hp), jnp.float32),
                            pltpu.VMEM((nb, Hp), jnp.float32)]),
        compiler_params=pltpu.CompilerParams(
            dimension_semantics=("parallel", "arbitrary"),
            vmem_limit_bytes=_VMEM_LIMIT),
    )(*args)


# ----------------------------------------------------------------------------
# Plain-JAX glue (layout plumbing only; NHWC end-to-end)
# ----------------------------------------------------------------------------
def add_coords_nhwc(x):
    # TODO(synk): CoordConv2d source not provided; standard AddCoords(with_r=True)
    # assumed: xx varies over H, yy over W, both scaled to [-1,1], rr=|(xx,yy)|.
    N, H, W, C = x.shape
    hd, wd = max(H - 1, 1), max(W - 1, 1)
    xx = jnp.broadcast_to(jnp.arange(H, dtype=jnp.float32)[:, None], (H, W))
    yy = jnp.broadcast_to(jnp.arange(W, dtype=jnp.float32)[None, :], (H, W))
    xx = xx / hd * 2.0 - 1.0
    yy = yy / wd * 2.0 - 1.0
    rr = jnp.sqrt(xx * xx + yy * yy)
    extra = jnp.broadcast_to(jnp.stack([xx, yy, rr], axis=-1)[None], (N, H, W, 3))
    return jnp.concatenate([x, extra], axis=-1)


def im2col_nhwc(x, k=3, s=2, p=1):
    # TODO(synk): im2col stays as XLA glue; an in-kernel strided-DMA im2col
    # (which would also allow fusing the whole conv stack into one kernel)
    # needs manual edge/pad handling and is left for a follow-up.
    N, H, W, C = x.shape
    Ho = (H - k + 2 * p) // s + 1
    Wo = (W - k + 2 * p) // s + 1
    xp = jnp.pad(x, ((0, 0), (p, p), (p, p), (0, 0)))
    cols = [xp[:, kh:kh + s * Ho:s, kw:kw + s * Wo:s, :]
            for kh in range(k) for kw in range(k)]
    pat = jnp.stack(cols, axis=3)                 # [N, Ho, Wo, 9, C]
    return pat.reshape(N * Ho * Wo, k * k * C), Ho, Wo


def vae_gst_forward(packed, inputs, eps):
    N = inputs.shape[0]
    n_mel = packed["n_input_dim"]
    # torch: view(N, 1, -1, n_mel) (NCHW)  ==  NHWC [N, T, n_mel, 1]
    x = inputs.reshape(N, -1, n_mel, 1)
    n_layers = len(packed["convs"])
    for li, layer in enumerate(packed["convs"]):
        if li == 0:
            x = add_coords_nhwc(x)                # CoordConv2d(with_r=True)
        patches, Ho, Wo = im2col_nhwc(x)
        y = conv_bn_relu(patches.astype(_MXU_DTYPE), layer["w"],
                         layer["gamma"], layer["beta"])
        if li + 1 < n_layers:
            x = y[:, :layer["cout"]].reshape(N, Ho, Wo, layer["cout"])
        else:
            # Keep the zero-padded output channels: the GRU input weights were
            # packed with matching zero rows, so neither a channel slice nor
            # the torch (C, W) transpose is needed before the GRU.
            x = y.reshape(N, Ho, Wo, layer["cp"])
    Nn, Hh, Wh, Cpl = x.shape
    seq = x.reshape(Nn, Hh, Wh * Cpl)             # feature order (w, c_padded)
    style_p, mu_p, logvar_p, z_p = gru_vae_head(seq, packed, eps)
    E, Z = packed["E"], packed["Z"]
    return (style_p[:N, :E], mu_p[:N, :Z], logvar_p[:N, :Z], z_p[:N, :Z])


# ----------------------------------------------------------------------------
# Parameter init (PyTorch-shaped) and one-time packing for the kernels
# ----------------------------------------------------------------------------
def init_params(key, hp):
    filters = [1] + hp["ref_enc_filters"]
    K = len(hp["ref_enc_filters"])
    ks = iter(jax.random.split(key, 64))
    params = {"n_input_dim": hp["n_mel_channels"]}

    convs = []
    for i in range(K):
        cin = filters[i] + (3 if i == 0 else 0)   # CoordConv adds xx, yy, rr
        cout = filters[i + 1]
        w = 0.1 * jax.random.normal(next(ks), (cout, cin, 3, 3), jnp.float32)
        b = 0.1 * jax.random.normal(next(ks), (cout,), jnp.float32)
        g = 1.0 + 0.1 * jax.random.normal(next(ks), (cout,), jnp.float32)
        bt = 0.1 * jax.random.normal(next(ks), (cout,), jnp.float32)
        convs.append((w, b, g, bt))
    params["convs"] = convs

    out_ch = hp["n_mel_channels"]
    for _ in range(K):                            # calculate_channels
        out_ch = (out_ch - 3 + 2) // 2 + 1
    D = hp["ref_enc_filters"][-1] * out_ch
    H = hp["E"] // 2
    params["gru_hidden"] = H
    params["gru_w_ih"] = 0.1 * jax.random.normal(next(ks), (3 * H, D), jnp.float32)
    params["gru_w_hh"] = 0.1 * jax.random.normal(next(ks), (3 * H, H), jnp.float32)
    params["gru_b_ih"] = 0.1 * jax.random.normal(next(ks), (3 * H,), jnp.float32)
    params["gru_b_hh"] = 0.1 * jax.random.normal(next(ks), (3 * H,), jnp.float32)

    G, Z, E = hp["ref_enc_gru_size"], hp["z_latent_dim"], hp["E"]
    params["fc1_w"] = 0.1 * jax.random.normal(next(ks), (Z, G), jnp.float32)
    params["fc1_b"] = 0.1 * jax.random.normal(next(ks), (Z,), jnp.float32)
    params["fc2_w"] = 0.1 * jax.random.normal(next(ks), (Z, G), jnp.float32)
    params["fc2_b"] = 0.1 * jax.random.normal(next(ks), (Z,), jnp.float32)
    params["fc3_w"] = 0.1 * jax.random.normal(next(ks), (E, Z), jnp.float32)
    params["fc3_b"] = 0.1 * jax.random.normal(next(ks), (E,), jnp.float32)
    return params


def pack_params(params):
    """One-time layout work: transpose / concat / lane-pad / permute weights."""
    packed = {"n_input_dim": params["n_input_dim"]}
    n_layers = len(params["convs"])

    convs = []
    for (w, _b, g, bt) in params["convs"]:
        # conv bias dropped: exactly cancelled by train-mode BN mean subtraction.
        cout, cin = w.shape[0], w.shape[1]
        cp = _rup(cout, LANE)
        w_k = jnp.transpose(w, (2, 3, 1, 0)).reshape(9 * cin, cout)  # (kh,kw,ci)
        convs.append(dict(
            w=jnp.pad(w_k, ((0, 0), (0, cp - cout))).astype(_MXU_DTYPE),
            gamma=jnp.pad(g, (0, cp - cout)).reshape(1, cp),
            beta=jnp.pad(bt, (0, cp - cout)).reshape(1, cp),
            cout=cout, cp=cp))
    packed["convs"] = convs

    # Spatial width after the conv stack (torch calculate_channels).
    Wh = params["n_input_dim"]
    for _ in range(n_layers):
        Wh = (Wh - 3 + 2) // 2 + 1
    Ch = params["convs"][-1][0].shape[0]          # last layer cout
    Cpl = convs[-1]["cp"]

    H = params["gru_hidden"]
    D_t = params["gru_w_ih"].shape[1]             # torch feature order (c, w)
    assert D_t == Ch * Wh
    Hp = _rup(H, LANE)
    wi = params["gru_w_ih"].reshape(3, H, D_t)    # PyTorch gate order r, z, n
    wh = params["gru_w_hh"].reshape(3, H, H)
    bi = params["gru_b_ih"].reshape(3, H)
    bh = params["gru_b_hh"].reshape(3, H)
    wi_t = jnp.zeros((D_t, 3 * Hp), jnp.float32)
    wh_cat = jnp.zeros((Hp, 3 * Hp), jnp.float32)
    bi_cat = jnp.zeros((1, 3 * Hp), jnp.float32)
    bh_cat = jnp.zeros((1, 3 * Hp), jnp.float32)
    for gidx in range(3):
        c0 = gidx * Hp
        wi_t = wi_t.at[:, c0:c0 + H].set(wi[gidx].T)
        wh_cat = wh_cat.at[:H, c0:c0 + H].set(wh[gidx].T)
        bi_cat = bi_cat.at[0, c0:c0 + H].set(bi[gidx])
        bh_cat = bh_cat.at[0, c0:c0 + H].set(bh[gidx])

    # Fold torch's (C, W) feature transpose into a row permutation of the GRU
    # input weights; rows for zero-padded conv channels stay zero, so the conv
    # output can feed the GRU in its natural NHWC (w, c_padded) order.
    D_k = Wh * Cpl
    d = np.arange(D_t)
    rows = (d % Wh) * Cpl + (d // Wh)             # d = c*Wh + w -> w*Cpl + c
    wi_kernel = jnp.zeros((D_k, 3 * Hp), jnp.float32).at[rows].set(wi_t)
    packed.update(wi_cat=wi_kernel.astype(_MXU_DTYPE), wh_cat=wh_cat,
                  bi_cat=bi_cat, bh_cat=bh_cat, Hp=Hp, D_k=D_k)

    Z, G = params["fc1_w"].shape
    E = params["fc3_w"].shape[0]
    assert G == H, "ref_enc_gru_size must equal E//2 (the GRU hidden size)"
    Zp, Ep = _rup(Z, LANE), _rup(E, LANE)
    packed["w1"] = jnp.pad(params["fc1_w"].T, ((0, Hp - G), (0, Zp - Z)))
    packed["b1"] = jnp.pad(params["fc1_b"], (0, Zp - Z)).reshape(1, Zp)
    packed["w2"] = jnp.pad(params["fc2_w"].T, ((0, Hp - G), (0, Zp - Z)))
    packed["b2"] = jnp.pad(params["fc2_b"], (0, Zp - Z)).reshape(1, Zp)
    packed["w3"] = jnp.pad(params["fc3_w"].T, ((0, Zp - Z), (0, Ep - E)))
    packed["b3"] = jnp.pad(params["fc3_b"], (0, Ep - E)).reshape(1, Ep)
    packed.update(Zp=Zp, Ep=Ep, Z=Z, E=E)
    return packed


if __name__ == "__main__":
    hp = dict(ref_enc_filters=[4, 8, 16], n_mel_channels=16,
              E=32, ref_enc_gru_size=16, z_latent_dim=8)
    key = jax.random.PRNGKey(0)
    kp, kx, ke = jax.random.split(key, 3)
    params = init_params(kp, hp)
    packed = pack_params(params)                  # one-time layout packing

    N, T = 2, 32                                  # mels: [N, Ty/r, n_mel*r]
    inputs = jax.random.normal(kx, (N, T, hp["n_mel_channels"]), jnp.float32)
    eps = jax.random.normal(ke, (N, hp["z_latent_dim"]), jnp.float32)

    fwd = jax.jit(functools.partial(vae_gst_forward, packed))
    style, mu, logvar, z = fwd(inputs, eps)
    jax.block_until_ready((style, mu, logvar, z))

    assert style.shape == (N, hp["E"])
    assert mu.shape == (N, hp["z_latent_dim"])
    assert logvar.shape == (N, hp["z_latent_dim"])
    assert z.shape == (N, hp["z_latent_dim"])
    assert bool(jnp.all(jnp.isfinite(style))) and bool(jnp.all(jnp.isfinite(z)))
    print("KERNEL_OK")
</pallas_src>

<mosaic_0001>
module attributes {stable_mosaic.version = 11 : i64} {
  func.func @_conv_fused_kernel(%arg0: memref<256x36xbf16, #tpu.memory_space<vmem>>, %arg1: memref<36x128xbf16, #tpu.memory_space<vmem>>, %arg2: memref<1x128xf32, #tpu.memory_space<vmem>>, %arg3: memref<1x128xf32, #tpu.memory_space<vmem>>, %arg4: memref<256x128xf32, #tpu.memory_space<vmem>>) attributes {dimension_semantics = [], scalar_prefetch = 0 : i64, scratch_operands = 0 : i64, tpu.core_type = #tpu.core_type<tc>} {
    %c0 = arith.constant 0 : index
    %c0_0 = arith.constant 0 : index
    %0 = vector.load %arg0[%c0, %c0_0] : memref<256x36xbf16, #tpu.memory_space<vmem>>, vector<256x36xbf16>
    %c0_1 = arith.constant 0 : index
    %c0_2 = arith.constant 0 : index
    %1 = vector.load %arg1[%c0_1, %c0_2] : memref<36x128xbf16, #tpu.memory_space<vmem>>, vector<36x128xbf16>
    %cst = arith.constant dense<0.000000e+00> : vector<256x128xf32>
    %2 = tpu.matmul %0, %1, %cst {dimension_numbers = #tpu.dot_dimension_numbers<[1], [0], [0], [1], [0, 0, 1, 1], [], []>} : vector<256x36xbf16>, vector<36x128xbf16>, vector<256x128xf32> -> vector<256x128xf32>
    %cst_3 = arith.constant dense<0.000000e+00> : vector<128xf32>
    %3 = vector.multi_reduction <add>, %2, %cst_3 [0] : vector<256x128xf32> to vector<128xf32>
    %4 = vector.shape_cast %3 : vector<128xf32> to vector<1x128xf32>
    %5 = arith.mulf %2, %2 : vector<256x128xf32>
    %cst_4 = arith.constant dense<0.000000e+00> : vector<128xf32>
    %6 = vector.multi_reduction <add>, %5, %cst_4 [0] : vector<256x128xf32> to vector<128xf32>
    %7 = vector.shape_cast %6 : vector<128xf32> to vector<1x128xf32>
    %cst_5 = arith.constant 3.906250e-03 : f32
    %8 = vector.broadcast %cst_5 : f32 to vector<1x128xf32>
    %9 = arith.mulf %4, %8 : vector<1x128xf32>
    %cst_6 = arith.constant 3.906250e-03 : f32
    %10 = vector.broadcast %cst_6 : f32 to vector<1x128xf32>
    %11 = arith.mulf %7, %10 : vector<1x128xf32>
    %12 = arith.mulf %9, %9 : vector<1x128xf32>
    %13 = arith.subf %11, %12 : vector<1x128xf32>
    %cst_7 = arith.constant 0.000000e+00 : f32
    %14 = vector.broadcast %cst_7 : f32 to vector<1x128xf32>
    %15 = arith.maximumf %13, %14 : vector<1x128xf32>
    %cst_8 = arith.constant 9.99999974E-6 : f32
    %16 = vector.broadcast %cst_8 : f32 to vector<1x128xf32>
    %17 = arith.addf %15, %16 : vector<1x128xf32>
    %18 = math.rsqrt %17 : vector<1x128xf32>
    %c0_9 = arith.constant 0 : index
    %c0_10 = arith.constant 0 : index
    %19 = vector.load %arg2[%c0_9, %c0_10] : memref<1x128xf32, #tpu.memory_space<vmem>>, vector<1x128xf32>
    %20 = arith.mulf %19, %18 : vector<1x128xf32>
    %c0_11 = arith.constant 0 : index
    %c0_12 = arith.constant 0 : index
    %21 = vector.load %arg3[%c0_11, %c0_12] : memref<1x128xf32, #tpu.memory_space<vmem>>, vector<1x128xf32>
    %22 = arith.mulf %9, %20 : vector<1x128xf32>
    %23 = arith.subf %21, %22 : vector<1x128xf32>
    %24 = vector.broadcast %20 : vector<1x128xf32> to vector<256x128xf32>
    %25 = arith.mulf %2, %24 : vector<256x128xf32>
    %26 = vector.broadcast %23 : vector<1x128xf32> to vector<256x128xf32>
    %27 = arith.addf %25, %26 : vector<256x128xf32>
    %cst_13 = arith.constant 0.000000e+00 : f32
    %28 = vector.broadcast %cst_13 : f32 to vector<256x128xf32>
    %29 = arith.maximumf %27, %28 : vector<256x128xf32>
    %c0_14 = arith.constant 0 : index
    %c0_15 = arith.constant 0 : index
    %30 = vector.load %arg4[%c0_14, %c0_15] : memref<256x128xf32, #tpu.memory_space<vmem>>, vector<256x128xf32>
    tpu.vector_store %arg4[%c0_14, %c0_15], %29 {strides = array<i32>} : memref<256x128xf32, #tpu.memory_space<vmem>>, vector<256x128xf32>,
    return
  }
}

module attributes {stable_mosaic.version = 11 : i64} {
  func.func @_conv_fused_kernel(%arg0: memref<64x36xbf16, #tpu.memory_space<vmem>>, %arg1: memref<36x128xbf16, #tpu.memory_space<vmem>>, %arg2: memref<1x128xf32, #tpu.memory_space<vmem>>, %arg3: memref<1x128xf32, #tpu.memory_space<vmem>>, %arg4: memref<64x128xf32, #tpu.memory_space<vmem>>) attributes {dimension_semantics = [], scalar_prefetch = 0 : i64, scratch_operands = 0 : i64, tpu.core_type = #tpu.core_type<tc>} {
    %c0 = arith.constant 0 : index
    %c0_0 = arith.constant 0 : index
    %0 = vector.load %arg0[%c0, %c0_0] : memref<64x36xbf16, #tpu.memory_space<vmem>>, vector<64x36xbf16>
    %c0_1 = arith.constant 0 : index
    %c0_2 = arith.constant 0 : index
    %1 = vector.load %arg1[%c0_1, %c0_2] : memref<36x128xbf16, #tpu.memory_space<vmem>>, vector<36x128xbf16>
    %cst = arith.constant dense<0.000000e+00> : vector<64x128xf32>
    %2 = tpu.matmul %0, %1, %cst {dimension_numbers = #tpu.dot_dimension_numbers<[1], [0], [0], [1], [0, 0, 1, 1], [], []>} : vector<64x36xbf16>, vector<36x128xbf16>, vector<64x128xf32> -> vector<64x128xf32>
    %cst_3 = arith.constant dense<0.000000e+00> : vector<128xf32>
    %3 = vector.multi_reduction <add>, %2, %cst_3 [0] : vector<64x128xf32> to vector<128xf32>
    %4 = vector.shape_cast %3 : vector<128xf32> to vector<1x128xf32>
    %5 = arith.mulf %2, %2 : vector<64x128xf32>
    %cst_4 = arith.constant dense<0.000000e+00> : vector<128xf32>
    %6 = vector.multi_reduction <add>, %5, %cst_4 [0] : vector<64x128xf32> to vector<128xf32>
    %7 = vector.shape_cast %6 : vector<128xf32> to vector<1x128xf32>
    %cst_5 = arith.constant 1.562500e-02 : f32
    %8 = vector.broadcast %cst_5 : f32 to vector<1x128xf32>
    %9 = arith.mulf %4, %8 : vector<1x128xf32>
    %cst_6 = arith.constant 1.562500e-02 : f32
    %10 = vector.broadcast %cst_6 : f32 to vector<1x128xf32>
    %11 = arith.mulf %7, %10 : vector<1x128xf32>
    %12 = arith.mulf %9, %9 : vector<1x128xf32>
    %13 = arith.subf %11, %12 : vector<1x128xf32>
    %cst_7 = arith.constant 0.000000e+00 : f32
    %14 = vector.broadcast %cst_7 : f32 to vector<1x128xf32>
    %15 = arith.maximumf %13, %14 : vector<1x128xf32>
    %cst_8 = arith.constant 9.99999974E-6 : f32
    %16 = vector.broadcast %cst_8 : f32 to vector<1x128xf32>
    %17 = arith.addf %15, %16 : vector<1x128xf32>
    %18 = math.rsqrt %17 : vector<1x128xf32>
    %c0_9 = arith.constant 0 : index
    %c0_10 = arith.constant 0 : index
    %19 = vector.load %arg2[%c0_9, %c0_10] : memref<1x128xf32, #tpu.memory_space<vmem>>, vector<1x128xf32>
    %20 = arith.mulf %19, %18 : vector<1x128xf32>
    %c0_11 = arith.constant 0 : index
    %c0_12 = arith.constant 0 : index
    %21 = vector.load %arg3[%c0_11, %c0_12] : memref<1x128xf32, #tpu.memory_space<vmem>>, vector<1x128xf32>
    %22 = arith.mulf %9, %20 : vector<1x128xf32>
    %23 = arith.subf %21, %22 : vector<1x128xf32>
    %24 = vector.broadcast %20 : vector<1x128xf32> to vector<64x128xf32>
    %25 = arith.mulf %2, %24 : vector<64x128xf32>
    %26 = vector.broadcast %23 : vector<1x128xf32> to vector<64x128xf32>
    %27 = arith.addf %25, %26 : vector<64x128xf32>
    %cst_13 = arith.constant 0.000000e+00 : f32
    %28 = vector.broadcast %cst_13 : f32 to vector<64x128xf32>
    %29 = arith.maximumf %27, %28 : vector<64x128xf32>
    %c0_14 = arith.constant 0 : index
    %c0_15 = arith.constant 0 : index
    %30 = vector.load %arg4[%c0_14, %c0_15] : memref<64x128xf32, #tpu.memory_space<vmem>>, vector<64x128xf32>
    tpu.vector_store %arg4[%c0_14, %c0_15], %29 {strides = array<i32>} : memref<64x128xf32, #tpu.memory_space<vmem>>, vector<64x128xf32>,
    return
  }
}

module attributes {stable_mosaic.version = 11 : i64} {
  func.func @kernel(%arg0: i32, %arg1: i32, %arg2: memref<1x32x256xbf16, #tpu.memory_space<vmem>>, %arg3: memref<256x384xbf16, #tpu.memory_space<vmem>>, %arg4: memref<128x384xf32, #tpu.memory_space<vmem>>, %arg5: memref<1x384xf32, #tpu.memory_space<vmem>>, %arg6: memref<1x384xf32, #tpu.memory_space<vmem>>, %arg7: memref<128x128xf32, #tpu.memory_space<vmem>>, %arg8: memref<1x128xf32, #tpu.memory_space<vmem>>, %arg9: memref<128x128xf32, #tpu.memory_space<vmem>>, %arg10: memref<1x128xf32, #tpu.memory_space<vmem>>, %arg11: memref<128x128xf32, #tpu.memory_space<vmem>>, %arg12: memref<1x128xf32, #tpu.memory_space<vmem>>, %arg13: memref<8x128xf32, #tpu.memory_space<vmem>>, %arg14: memref<8x128xf32, #tpu.memory_space<vmem>>, %arg15: memref<8x128xf32, #tpu.memory_space<vmem>>, %arg16: memref<8x128xf32, #tpu.memory_space<vmem>>, %arg17: memref<8x128xf32, #tpu.memory_space<vmem>>, %arg18: memref<32x384xf32, #tpu.memory_space<vmem>>, %arg19: memref<8x128xf32, #tpu.memory_space<vmem>>) attributes {dimension_semantics = [#tpu.dimension_semantics<parallel>, #tpu.dimension_semantics<arbitrary>], iteration_bounds = array<i64: 1, 1>, scalar_prefetch = 0 : i64, scratch_operands = 2 : i64, tpu.core_type = #tpu.core_type<tc>, window_params = [{transform_indices = @transform_0, window_bounds = array<i64: 1, 32, 256>}, {pipeline_mode = #tpu.pipeline_mode<synchronous>, transform_indices = @transform_1, window_bounds = array<i64: 256, 384>}, {pipeline_mode = #tpu.pipeline_mode<synchronous>, transform_indices = @transform_2, window_bounds = array<i64: 128, 384>}, {pipeline_mode = #tpu.pipeline_mode<synchronous>, transform_indices = @transform_3, window_bounds = array<i64: 1, 384>}, {pipeline_mode = #tpu.pipeline_mode<synchronous>, transform_indices = @transform_4, window_bounds = array<i64: 1, 384>}, {pipeline_mode = #tpu.pipeline_mode<synchronous>, transform_indices = @transform_5, window_bounds = array<i64: 128, 128>}, {pipeline_mode = #tpu.pipeline_mode<synchronous>, transform_indices = @transform_6, window_bounds = array<i64: 1, 128>}, {pipeline_mode = #tpu.pipeline_mode<synchronous>, transform_indices = @transform_7, window_bounds = array<i64: 128, 128>}, {pipeline_mode = #tpu.pipeline_mode<synchronous>, transform_indices = @transform_8, window_bounds = array<i64: 1, 128>}, {pipeline_mode = #tpu.pipeline_mode<synchronous>, transform_indices = @transform_9, window_bounds = array<i64: 128, 128>}, {pipeline_mode = #tpu.pipeline_mode<synchronous>, transform_indices = @transform_10, window_bounds = array<i64: 1, 128>}, {transform_indices = @transform_11, window_bounds = array<i64: 8, 128>}, {transform_indices = @transform_12, window_bounds = array<i64: 8, 128>}, {transform_indices = @transform_13, window_bounds = array<i64: 8, 128>}, {transform_indices = @transform_14, window_bounds = array<i64: 8, 128>}, {transform_indices = @transform_15, window_bounds = array<i64: 8, 128>}]} {
    %c0_i32 = arith.constant 0 : i32
    %0 = arith.cmpi eq, %arg1, %c0_i32 : i32
    %1 = arith.extui %0 : i1 to i32
    %c0_i32_0 = arith.constant 0 : i32
    %2 = arith.cmpi ne, %1, %c0_i32_0 : i32
    scf.if %2 {
      %cst_55 = arith.constant 0.000000e+00 : f32
      %156 = vector.broadcast %cst_55 : f32 to vector<8x128xf32>
      %c0_56 = arith.constant 0 : index
      %c0_57 = arith.constant 0 : index
      %157 = vector.load %arg19[%c0_56, %c0_57] : memref<8x128xf32, #tpu.memory_space<vmem>>, vector<8x128xf32>
      tpu.vector_store %arg19[%c0_56, %c0_57], %156 {strides = array<i32>} : memref<8x128xf32, #tpu.memory_space<vmem>>, vector<8x128xf32>,
    } else {
    }
    %c0 = arith.constant 0 : index
    %c0_1 = arith.constant 0 : index
    %c0_2 = arith.constant 0 : index
    %3 = vector.load %arg2[%c0, %c0_1, %c0_2] : memref<1x32x256xbf16, #tpu.memory_space<vmem>>, vector<1x32x256xbf16>
    %4 = vector.shape_cast %3 : vector<1x32x256xbf16> to vector<32x256xbf16>
    %c0_3 = arith.constant 0 : index
    %c0_4 = arith.constant 0 : index
    %5 = vector.load %arg3[%c0_3, %c0_4] : memref<256x384xbf16, #tpu.memory_space<vmem>>, vector<256x384xbf16>
    %cst = arith.constant dense<0.000000e+00> : vector<32x384xf32>
    %6 = tpu.matmul %4, %5, %cst {dimension_numbers = #tpu.dot_dimension_numbers<[1], [0], [0], [1], [0, 0, 1, 1], [], []>} : vector<32x256xbf16>, vector<256x384xbf16>, vector<32x384xf32> -> vector<32x384xf32>
    %c0_5 = arith.constant 0 : index
    %c0_6 = arith.constant 0 : index
    %7 = vector.load %arg5[%c0_5, %c0_6] : memref<1x384xf32, #tpu.memory_space<vmem>>, vector<1x384xf32>
    %8 = vector.broadcast %7 : vector<1x384xf32> to vector<32x384xf32>
    %9 = arith.addf %6, %8 : vector<32x384xf32>
    %c0_7 = arith.constant 0 : index
    %c0_8 = arith.constant 0 : index
    %10 = vector.load %arg18[%c0_7, %c0_8] : memref<32x384xf32, #tpu.memory_space<vmem>>, vector<32x384xf32>
    tpu.vector_store %arg18[%c0_7, %c0_8], %9 {strides = array<i32>} : memref<32x384xf32, #tpu.memory_space<vmem>>, vector<32x384xf32>,
    %c0_9 = arith.constant 0 : index
    %c0_10 = arith.constant 0 : index
    %11 = vector.load %arg19[%c0_9, %c0_10] : memref<8x128xf32, #tpu.memory_space<vmem>>, vector<8x128xf32>
    %c0_i32_11 = arith.constant 0 : i32
    %c8_i32 = arith.constant 8 : i32
    %12 = arith.muli %c0_i32_11, %c8_i32 : i32
    %13 = tpu.assume_multiple %12, 8 : i32
    %14 = arith.index_cast %13 : i32 to index
    %c0_12 = arith.constant 0 : index
    %15 = vector.load %arg18[%14, %c0_12] : memref<32x384xf32, #tpu.memory_space<vmem>>, vector<8x384xf32>
    %c0_13 = arith.constant 0 : index
    %c0_14 = arith.constant 0 : index
    %16 = vector.load %arg4[%c0_13, %c0_14] : memref<128x384xf32, #tpu.memory_space<vmem>>, vector<128x384xf32>
    %cst_15 = arith.constant dense<0.000000e+00> : vector<8x384xf32>
    %17 = tpu.matmul %11, %16, %cst_15 {dimension_numbers = #tpu.dot_dimension_numbers<[1], [0], [0], [1], [0, 0, 1, 1], [], []>} : vector<8x128xf32>, vector<128x384xf32>, vector<8x384xf32> -> vector<8x384xf32>
    %c0_16 = arith.constant 0 : index
    %c0_17 = arith.constant 0 : index
    %18 = vector.load %arg6[%c0_16, %c0_17] : memref<1x384xf32, #tpu.memory_space<vmem>>, vector<1x384xf32>
    %19 = vector.broadcast %18 : vector<1x384xf32> to vector<8x384xf32>
    %20 = arith.addf %17, %19 : vector<8x384xf32>
    %21 = vector.extract_strided_slice %15 {offsets = [0, 0], sizes = [8, 128], strides = [1, 1]} : vector<8x384xf32> to vector<8x128xf32>
    %22 = vector.extract_strided_slice %20 {offsets = [0, 0], sizes = [8, 128], strides = [1, 1]} : vector<8x384xf32> to vector<8x128xf32>
    %23 = arith.addf %21, %22 : vector<8x128xf32>
    %24 = arith.negf %23 : vector<8x128xf32>
    %25 = math.exp %24 : vector<8x128xf32>
    %cst_18 = arith.constant 1.000000e+00 : f32
    %26 = vector.broadcast %cst_18 : f32 to vector<8x128xf32>
    %27 = arith.addf %26, %25 : vector<8x128xf32>
    %28 = arith.divf %26, %27 : vector<8x128xf32>
    %29 = vector.extract_strided_slice %15 {offsets = [0, 128], sizes = [8, 128], strides = [1, 1]} : vector<8x384xf32> to vector<8x128xf32>
    %30 = vector.extract_strided_slice %20 {offsets = [0, 128], sizes = [8, 128], strides = [1, 1]} : vector<8x384xf32> to vector<8x128xf32>
    %31 = arith.addf %29, %30 : vector<8x128xf32>
    %32 = arith.negf %31 : vector<8x128xf32>
    %33 = math.exp %32 : vector<8x128xf32>
    %cst_19 = arith.constant 1.000000e+00 : f32
    %34 = vector.broadcast %cst_19 : f32 to vector<8x128xf32>
    %35 = arith.addf %34, %33 : vector<8x128xf32>
    %36 = arith.divf %34, %35 : vector<8x128xf32>
    %37 = vector.extract_strided_slice %15 {offsets = [0, 256], sizes = [8, 128], strides = [1, 1]} : vector<8x384xf32> to vector<8x128xf32>
    %38 = vector.extract_strided_slice %20 {offsets = [0, 256], sizes = [8, 128], strides = [1, 1]} : vector<8x384xf32> to vector<8x128xf32>
    %39 = arith.mulf %28, %38 : vector<8x128xf32>
    %40 = arith.addf %37, %39 : vector<8x128xf32>
    %41 = math.tanh %40 : vector<8x128xf32>
    %cst_20 = arith.constant 1.000000e+00 : f32
    %42 = vector.broadcast %cst_20 : f32 to vector<8x128xf32>
    %43 = arith.subf %42, %36 : vector<8x128xf32>
    %44 = arith.mulf %43, %41 : vector<8x128xf32>
    %45 = arith.mulf %36, %11 : vector<8x128xf32>
    %46 = arith.addf %44, %45 : vector<8x128xf32>
    %c1_i32 = arith.constant 1 : i32
    %c8_i32_21 = arith.constant 8 : i32
    %47 = arith.muli %c1_i32, %c8_i32_21 : i32
    %48 = tpu.assume_multiple %47, 8 : i32
    %49 = arith.index_cast %48 : i32 to index
    %c0_22 = arith.constant 0 : index
    %50 = vector.load %arg18[%49, %c0_22] : memref<32x384xf32, #tpu.memory_space<vmem>>, vector<8x384xf32>
    %c0_23 = arith.constant 0 : index
    %c0_24 = arith.constant 0 : index
    %51 = vector.load %arg4[%c0_23, %c0_24] : memref<128x384xf32, #tpu.memory_space<vmem>>, vector<128x384xf32>
    %cst_25 = arith.constant dense<0.000000e+00> : vector<8x384xf32>
    %52 = tpu.matmul %46, %51, %cst_25 {dimension_numbers = #tpu.dot_dimension_numbers<[1], [0], [0], [1], [0, 0, 1, 1], [], []>} : vector<8x128xf32>, vector<128x384xf32>, vector<8x384xf32> -> vector<8x384xf32>
    %c0_26 = arith.constant 0 : index
    %c0_27 = arith.constant 0 : index
    %53 = vector.load %arg6[%c0_26, %c0_27] : memref<1x384xf32, #tpu.memory_space<vmem>>, vector<1x384xf32>
    %54 = vector.broadcast %53 : vector<1x384xf32> to vector<8x384xf32>
    %55 = arith.addf %52, %54 : vector<8x384xf32>
    %56 = vector.extract_strided_slice %50 {offsets = [0, 0], sizes = [8, 128], strides = [1, 1]} : vector<8x384xf32> to vector<8x128xf32>
    %57 = vector.extract_strided_slice %55 {offsets = [0, 0], sizes = [8, 128], strides = [1, 1]} : vector<8x384xf32> to vector<8x128xf32>
    %58 = arith.addf %56, %57 : vector<8x128xf32>
    %59 = arith.negf %58 : vector<8x128xf32>
    %60 = math.exp %59 : vector<8x128xf32>
    %cst_28 = arith.constant 1.000000e+00 : f32
    %61 = vector.broadcast %cst_28 : f32 to vector<8x128xf32>
    %62 = arith.addf %61, %60 : vector<8x128xf32>
    %63 = arith.divf %61, %62 : vector<8x128xf32>
    %64 = vector.extract_strided_slice %50 {offsets = [0, 128], sizes = [8, 128], strides = [1, 1]} : vector<8x384xf32> to vector<8x128xf32>
    %65 = vector.extract_strided_slice %55 {offsets = [0, 128], sizes = [8, 128], strides = [1, 1]} : vector<8x384xf32> to vector<8x128xf32>
    %66 = arith.addf %64, %65 : vector<8x128xf32>
    %67 = arith.negf %66 : vector<8x128xf32>
    %68 = math.exp %67 : vector<8x128xf32>
    %cst_29 = arith.constant 1.000000e+00 : f32
    %69 = vector.broadcast %cst_29 : f32 to vector<8x128xf32>
    %70 = arith.addf %69, %68 : vector<8x128xf32>
    %71 = arith.divf %69, %70 : vector<8x128xf32>
    %72 = vector.extract_strided_slice %50 {offsets = [0, 256], sizes = [8, 128], strides = [1, 1]} : vector<8x384xf32> to vector<8x128xf32>
    %73 = vector.extract_strided_slice %55 {offsets = [0, 256], sizes = [8, 128], strides = [1, 1]} : vector<8x384xf32> to vector<8x128xf32>
    %74 = arith.mulf %63, %73 : vector<8x128xf32>
    %75 = arith.addf %72, %74 : vector<8x128xf32>
    %76 = math.tanh %75 : vector<8x128xf32>
    %cst_30 = arith.constant 1.000000e+00 : f32
    %77 = vector.broadcast %cst_30 : f32 to vector<8x128xf32>
    %78 = arith.subf %77, %71 : vector<8x128xf32>
    %79 = arith.mulf %78, %76 : vector<8x128xf32>
    %80 = arith.mulf %71, %46 : vector<8x128xf32>
    %81 = arith.addf %79, %80 : vector<8x128xf32>
    %c2_i32 = arith.constant 2 : i32
    %c8_i32_31 = arith.constant 8 : i32
    %82 = arith.muli %c2_i32, %c8_i32_31 : i32
    %83 = tpu.assume_multiple %82, 8 : i32
    %84 = arith.index_cast %83 : i32 to index
    %c0_32 = arith.constant 0 : index
    %85 = vector.load %arg18[%84, %c0_32] : memref<32x384xf32, #tpu.memory_space<vmem>>, vector<8x384xf32>
    %c0_33 = arith.constant 0 : index
    %c0_34 = arith.constant 0 : index
    %86 = vector.load %arg4[%c0_33, %c0_34] : memref<128x384xf32, #tpu.memory_space<vmem>>, vector<128x384xf32>
    %cst_35 = arith.constant dense<0.000000e+00> : vector<8x384xf32>
    %87 = tpu.matmul %81, %86, %cst_35 {dimension_numbers = #tpu.dot_dimension_numbers<[1], [0], [0], [1], [0, 0, 1, 1], [], []>} : vector<8x128xf32>, vector<128x384xf32>, vector<8x384xf32> -> vector<8x384xf32>
    %c0_36 = arith.constant 0 : index
    %c0_37 = arith.constant 0 : index
    %88 = vector.load %arg6[%c0_36, %c0_37] : memref<1x384xf32, #tpu.memory_space<vmem>>, vector<1x384xf32>
    %89 = vector.broadcast %88 : vector<1x384xf32> to vector<8x384xf32>
    %90 = arith.addf %87, %89 : vector<8x384xf32>
    %91 = vector.extract_strided_slice %85 {offsets = [0, 0], sizes = [8, 128], strides = [1, 1]} : vector<8x384xf32> to vector<8x128xf32>
    %92 = vector.extract_strided_slice %90 {offsets = [0, 0], sizes = [8, 128], strides = [1, 1]} : vector<8x384xf32> to vector<8x128xf32>
    %93 = arith.addf %91, %92 : vector<8x128xf32>
    %94 = arith.negf %93 : vector<8x128xf32>
    %95 = math.exp %94 : vector<8x128xf32>
    %cst_38 = arith.constant 1.000000e+00 : f32
    %96 = vector.broadcast %cst_38 : f32 to vector<8x128xf32>
    %97 = arith.addf %96, %95 : vector<8x128xf32>
    %98 = arith.divf %96, %97 : vector<8x128xf32>
    %99 = vector.extract_strided_slice %85 {offsets = [0, 128], sizes = [8, 128], strides = [1, 1]} : vector<8x384xf32> to vector<8x128xf32>
    %100 = vector.extract_strided_slice %90 {offsets = [0, 128], sizes = [8, 128], strides = [1, 1]} : vector<8x384xf32> to vector<8x128xf32>
    %101 = arith.addf %99, %100 : vector<8x128xf32>
    %102 = arith.negf %101 : vector<8x128xf32>
    %103 = math.exp %102 : vector<8x128xf32>
    %cst_39 = arith.constant 1.000000e+00 : f32
    %104 = vector.broadcast %cst_39 : f32 to vector<8x128xf32>
    %105 = arith.addf %104, %103 : vector<8x128xf32>
    %106 = arith.divf %104, %105 : vector<8x128xf32>
    %107 = vector.extract_strided_slice %85 {offsets = [0, 256], sizes = [8, 128], strides = [1, 1]} : vector<8x384xf32> to vector<8x128xf32>
    %108 = vector.extract_strided_slice %90 {offsets = [0, 256], sizes = [8, 128], strides = [1, 1]} : vector<8x384xf32> to vector<8x128xf32>
    %109 = arith.mulf %98, %108 : vector<8x128xf32>
    %110 = arith.addf %107, %109 : vector<8x128xf32>
    %111 = math.tanh %110 : vector<8x128xf32>
    %cst_40 = arith.constant 1.000000e+00 : f32
    %112 = vector.broadcast %cst_40 : f32 to vector<8x128xf32>
    %113 = arith.subf %112, %106 : vector<8x128xf32>
    %114 = arith.mulf %113, %111 : vector<8x128xf32>
    %115 = arith.mulf %106, %81 : vector<8x128xf32>
    %116 = arith.addf %114, %115 : vector<8x128xf32>
    %c3_i32 = arith.constant 3 : i32
    %c8_i32_41 = arith.constant 8 : i32
    %117 = arith.muli %c3_i32, %c8_i32_41 : i32
    %118 = tpu.assume_multiple %117, 8 : i32
    %119 = arith.index_cast %118 : i32 to index
    %c0_42 = arith.constant 0 : index
    %120 = vector.load %arg18[%119, %c0_42] : memref<32x384xf32, #tpu.memory_space<vmem>>, vector<8x384xf32>
    %c0_43 = arith.constant 0 : index
    %c0_44 = arith.constant 0 : index
    %121 = vector.load %arg4[%c0_43, %c0_44] : memref<128x384xf32, #tpu.memory_space<vmem>>, vector<128x384xf32>
    %cst_45 = arith.constant dense<0.000000e+00> : vector<8x384xf32>
    %122 = tpu.matmul %116, %121, %cst_45 {dimension_numbers = #tpu.dot_dimension_numbers<[1], [0], [0], [1], [0, 0, 1, 1], [], []>} : vector<8x128xf32>, vector<128x384xf32>, vector<8x384xf32> -> vector<8x384xf32>
    %c0_46 = arith.constant 0 : index
    %c0_47 = arith.constant 0 : index
    %123 = vector.load %arg6[%c0_46, %c0_47] : memref<1x384xf32, #tpu.memory_space<vmem>>, vector<1x384xf32>
    %124 = vector.broadcast %123 : vector<1x384xf32> to vector<8x384xf32>
    %125 = arith.addf %122, %124 : vector<8x384xf32>
    %126 = vector.extract_strided_slice %120 {offsets = [0, 0], sizes = [8, 128], strides = [1, 1]} : vector<8x384xf32> to vector<8x128xf32>
    %127 = vector.extract_strided_slice %125 {offsets = [0, 0], sizes = [8, 128], strides = [1, 1]} : vector<8x384xf32> to vector<8x128xf32>
    %128 = arith.addf %126, %127 : vector<8x128xf32>
    %129 = arith.negf %128 : vector<8x128xf32>
    %130 = math.exp %129 : vector<8x128xf32>
    %cst_48 = arith.constant 1.000000e+00 : f32
    %131 = vector.broadcast %cst_48 : f32 to vector<8x128xf32>
    %132 = arith.addf %131, %130 : vector<8x128xf32>
    %133 = arith.divf %131, %132 : vector<8x128xf32>
    %134 = vector.extract_strided_slice %120 {offsets = [0, 128], sizes = [8, 128], strides = [1, 1]} : vector<8x384xf32> to vector<8x128xf32>
    %135 = vector.extract_strided_slice %125 {offsets = [0, 128], sizes = [8, 128], strides = [1, 1]} : vector<8x384xf32> to vector<8x128xf32>
    %136 = arith.addf %134, %135 : vector<8x128xf32>
    %137 = arith.negf %136 : vector<8x128xf32>
    %138 = math.exp %137 : vector<8x128xf32>
    %cst_49 = arith.constant 1.000000e+00 : f32
    %139 = vector.broadcast %cst_49 : f32 to vector<8x128xf32>
    %140 = arith.addf %139, %138 : vector<8x128xf32>
    %141 = arith.divf %139, %140 : vector<8x128xf32>
    %142 = vector.extract_strided_slice %120 {offsets = [0, 256], sizes = [8, 128], strides = [1, 1]} : vector<8x384xf32> to vector<8x128xf32>
    %143 = vector.extract_strided_slice %125 {offsets = [0, 256], sizes = [8, 128], strides = [1, 1]} : vector<8x384xf32> to vector<8x128xf32>
    %144 = arith.mulf %133, %143 : vector<8x128xf32>
    %145 = arith.addf %142, %144 : vector<8x128xf32>
    %146 = math.tanh %145 : vector<8x128xf32>
    %cst_50 = arith.constant 1.000000e+00 : f32
    %147 = vector.broadcast %cst_50 : f32 to vector<8x128xf32>
    %148 = arith.subf %147, %141 : vector<8x128xf32>
    %149 = arith.mulf %148, %146 : vector<8x128xf32>
    %150 = arith.mulf %141, %116 : vector<8x128xf32>
    %151 = arith.addf %149, %150 : vector<8x128xf32>
    %c4_i32 = arith.constant 4 : i32
    %c0_51 = arith.constant 0 : index
    %c0_52 = arith.constant 0 : index
    %152 = vector.load %arg19[%c0_51, %c0_52] : memref<8x128xf32, #tpu.memory_space<vmem>>, vector<8x128xf32>
    tpu.vector_store %arg19[%c0_51, %c0_52], %151 {strides = array<i32>} : memref<8x128xf32, #tpu.memory_space<vmem>>, vector<8x128xf32>,
    %c0_i32_53 = arith.constant 0 : i32
    %153 = arith.cmpi eq, %arg1, %c0_i32_53 : i32
    %154 = arith.extui %153 : i1 to i32
    %c0_i32_54 = arith.constant 0 : i32
    %155 = arith.cmpi ne, %154, %c0_i32_54 : i32
    scf.if %155 {
      %c0_55 = arith.constant 0 : index
      %c0_56 = arith.constant 0 : index
      %156 = vector.load %arg19[%c0_55, %c0_56] : memref<8x128xf32, #tpu.memory_space<vmem>>, vector<8x128xf32>
      %c0_57 = arith.constant 0 : index
      %c0_58 = arith.constant 0 : index
      %157 = vector.load %arg7[%c0_57, %c0_58] : memref<128x128xf32, #tpu.memory_space<vmem>>, vector<128x128xf32>
      %cst_59 = arith.constant dense<0.000000e+00> : vector<8x128xf32>
      %158 = tpu.matmul %156, %157, %cst_59 {dimension_numbers = #tpu.dot_dimension_numbers<[1], [0], [0], [1], [0, 0, 1, 1], [], []>} : vector<8x128xf32>, vector<128x128xf32>, vector<8x128xf32> -> vector<8x128xf32>
      %c0_60 = arith.constant 0 : index
      %c0_61 = arith.constant 0 : index
      %159 = vector.load %arg8[%c0_60, %c0_61] : memref<1x128xf32, #tpu.memory_space<vmem>>, vector<1x128xf32>
      %160 = vector.broadcast %159 : vector<1x128xf32> to vector<8x128xf32>
      %161 = arith.addf %158, %160 : vector<8x128xf32>
      %c0_62 = arith.constant 0 : index
      %c0_63 = arith.constant 0 : index
      %162 = vector.load %arg9[%c0_62, %c0_63] : memref<128x128xf32, #tpu.memory_space<vmem>>, vector<128x128xf32>
      %cst_64 = arith.constant dense<0.000000e+00> : vector<8x128xf32>
      %163 = tpu.matmul %156, %162, %cst_64 {dimension_numbers = #tpu.dot_dimension_numbers<[1], [0], [0], [1], [0, 0, 1, 1], [], []>} : vector<8x128xf32>, vector<128x128xf32>, vector<8x128xf32> -> vector<8x128xf32>
      %c0_65 = arith.constant 0 : index
      %c0_66 = arith.constant 0 : index
      %164 = vector.load %arg10[%c0_65, %c0_66] : memref<1x128xf32, #tpu.memory_space<vmem>>, vector<1x128xf32>
      %165 = vector.broadcast %164 : vector<1x128xf32> to vector<8x128xf32>
      %166 = arith.addf %163, %165 : vector<8x128xf32>
      %c0_67 = arith.constant 0 : index
      %c0_68 = arith.constant 0 : index
      %167 = vector.load %arg13[%c0_67, %c0_68] : memref<8x128xf32, #tpu.memory_space<vmem>>, vector<8x128xf32>
      %cst_69 = arith.constant 5.000000e-01 : f32
      %168 = vector.broadcast %cst_69 : f32 to vector<8x128xf32>
      %169 = arith.mulf %168, %166 : vector<8x128xf32>
      %170 = math.exp %169 : vector<8x128xf32>
      %171 = arith.mulf %167, %170 : vector<8x128xf32>
      %172 = arith.addf %161, %171 : vector<8x128xf32>
      %c0_70 = arith.constant 0 : index
      %c0_71 = arith.constant 0 : index
      %173 = vector.load %arg11[%c0_70, %c0_71] : memref<128x128xf32, #tpu.memory_space<vmem>>, vector<128x128xf32>
      %cst_72 = arith.constant dense<0.000000e+00> : vector<8x128xf32>
      %174 = tpu.matmul %172, %173, %cst_72 {dimension_numbers = #tpu.dot_dimension_numbers<[1], [0], [0], [1], [0, 0, 1, 1], [], []>} : vector<8x128xf32>, vector<128x128xf32>, vector<8x128xf32> -> vector<8x128xf32>
      %c0_73 = arith.constant 0 : index
      %c0_74 = arith.constant 0 : index
      %175 = vector.load %arg12[%c0_73, %c0_74] : memref<1x128xf32, #tpu.memory_space<vmem>>, vector<1x128xf32>
      %176 = vector.broadcast %175 : vector<1x128xf32> to vector<8x128xf32>
      %177 = arith.addf %174, %176 : vector<8x128xf32>
      %c0_75 = arith.constant 0 : index
      %c0_76 = arith.constant 0 : index
      %178 = vector.load %arg14[%c0_75, %c0_76] : memref<8x128xf32, #tpu.memory_space<vmem>>, vector<8x128xf32>
      tpu.vector_store %arg14[%c0_75, %c0_76], %177 {strides = array<i32>} : memref<8x128xf32, #tpu.memory_space<vmem>>, vector<8x128xf32>,
      %c0_77 = arith.constant 0 : index
      %c0_78 = arith.constant 0 : index
      %179 = vector.load %arg15[%c0_77, %c0_78] : memref<8x128xf32, #tpu.memory_space<vmem>>, vector<8x128xf32>
      tpu.vector_store %arg15[%c0_77, %c0_78], %161 {strides = array<i32>} : memref<8x128xf32, #tpu.memory_space<vmem>>, vector<8x128xf32>,
      %c0_79 = arith.constant 0 : index
      %c0_80 = arith.constant 0 : index
      %180 = vector.load %arg16[%c0_79, %c0_80] : memref<8x128xf32, #tpu.memory_space<vmem>>, vector<8x128xf32>
      tpu.vector_store %arg16[%c0_79, %c0_80], %166 {strides = array<i32>} : memref<8x128xf32, #tpu.memory_space<vmem>>, vector<8x128xf32>,
      %c0_81 = arith.constant 0 : index
      %c0_82 = arith.constant 0 : index
      %181 = vector.load %arg17[%c0_81, %c0_82] : memref<8x128xf32, #tpu.memory_space<vmem>>, vector<8x128xf32>
      tpu.vector_store %arg17[%c0_81, %c0_82], %172 {strides = array<i32>} : memref<8x128xf32, #tpu.memory_space<vmem>>, vector<8x128xf32>,
    } else {
    }
    return
  }
  func.func @transform_0(%arg0: i32, %arg1: i32) -> (i32, i32, i32) {
    %c0_i32 = arith.constant 0 : i32
    %c0_i32_0 = arith.constant 0 : i32
    return %arg0, %arg1, %c0_i32 : i32, i32, i32
  }
  func.func @transform_1(%arg0: i32, %arg1: i32) -> (i32, i32) {
    %c0_i32 = arith.constant 0 : i32
    %c0_i32_0 = arith.constant 0 : i32
    %c0_i32_1 = arith.constant 0 : i32
    return %c0_i32, %c0_i32_0 : i32, i32
  }
  func.func @transform_2(%arg0: i32, %arg1: i32) -> (i32, i32) {
    %c0_i32 = arith.constant 0 : i32
    %c0_i32_0 = arith.constant 0 : i32
    %c0_i32_1 = arith.constant 0 : i32
    return %c0_i32, %c0_i32_0 : i32, i32
  }
  func.func @transform_3(%arg0: i32, %arg1: i32) -> (i32, i32) {
    %c0_i32 = arith.constant 0 : i32
    %c0_i32_0 = arith.constant 0 : i32
    %c0_i32_1 = arith.constant 0 : i32
    return %c0_i32, %c0_i32_0 : i32, i32
  }
  func.func @transform_4(%arg0: i32, %arg1: i32) -> (i32, i32) {
    %c0_i32 = arith.constant 0 : i32
    %c0_i32_0 = arith.constant 0 : i32
    %c0_i32_1 = arith.constant 0 : i32
    return %c0_i32, %c0_i32_0 : i32, i32
  }
  func.func @transform_5(%arg0: i32, %arg1: i32) -> (i32, i32) {
    %c0_i32 = arith.constant 0 : i32
    %c0_i32_0 = arith.constant 0 : i32
    %c0_i32_1 = arith.constant 0 : i32
    return %c0_i32, %c0_i32_0 : i32, i32
  }
  func.func @transform_6(%arg0: i32, %arg1: i32) -> (i32, i32) {
    %c0_i32 = arith.constant 0 : i32
    %c0_i32_0 = arith.constant 0 : i32
    %c0_i32_1 = arith.constant 0 : i32
    return %c0_i32, %c0_i32_0 : i32, i32
  }
  func.func @transform_7(%arg0: i32, %arg1: i32) -> (i32, i32) {
    %c0_i32 = arith.constant 0 : i32
    %c0_i32_0 = arith.constant 0 : i32
    %c0_i32_1 = arith.constant 0 : i32
    return %c0_i32, %c0_i32_0 : i32, i32
  }
  func.func @transform_8(%arg0: i32, %arg1: i32) -> (i32, i32) {
    %c0_i32 = arith.constant 0 : i32
    %c0_i32_0 = arith.constant 0 : i32
    %c0_i32_1 = arith.constant 0 : i32
    return %c0_i32, %c0_i32_0 : i32, i32
  }
  func.func @transform_9(%arg0: i32, %arg1: i32) -> (i32, i32) {
    %c0_i32 = arith.constant 0 : i32
    %c0_i32_0 = arith.constant 0 : i32
    %c0_i32_1 = arith.constant 0 : i32
    return %c0_i32, %c0_i32_0 : i32, i32
  }
  func.func @transform_10(%arg0: i32, %arg1: i32) -> (i32, i32) {
    %c0_i32 = arith.constant 0 : i32
    %c0_i32_0 = arith.constant 0 : i32
    %c0_i32_1 = arith.constant 0 : i32
    return %c0_i32, %c0_i32_0 : i32, i32
  }
  func.func @transform_11(%arg0: i32, %arg1: i32) -> (i32, i32) {
    %c0_i32 = arith.constant 0 : i32
    %c0_i32_0 = arith.constant 0 : i32
    return %arg0, %c0_i32 : i32, i32
  }
  func.func @transform_12(%arg0: i32, %arg1: i32) -> (i32, i32) {
    %c0_i32 = arith.constant 0 : i32
    %c0_i32_0 = arith.constant 0 : i32
    return %arg0, %c0_i32 : i32, i32
  }
  func.func @transform_13(%arg0: i32, %arg1: i32) -> (i32, i32) {
    %c0_i32 = arith.constant 0 : i32
    %c0_i32_0 = arith.constant 0 : i32
    return %arg0, %c0_i32 : i32, i32
  }
  func.func @transform_14(%arg0: i32, %arg1: i32) -> (i32, i32) {
    %c0_i32 = arith.constant 0 : i32
    %c0_i32_0 = arith.constant 0 : i32
    return %arg0, %c0_i32 : i32, i32
  }
  func.func @transform_15(%arg0: i32, %arg1: i32) -> (i32, i32) {
    %c0_i32 = arith.constant 0 : i32
    %c0_i32_0 = arith.constant 0 : i32
    return %arg0, %c0_i32 : i32, i32
  }
}

module attributes {stable_mosaic.version = 11 : i64} {
  func.func @_conv_fused_kernel(%arg0: memref<16x72xbf16, #tpu.memory_space<vmem>>, %arg1: memref<72x128xbf16, #tpu.memory_space<vmem>>, %arg2: memref<1x128xf32, #tpu.memory_space<vmem>>, %arg3: memref<1x128xf32, #tpu.memory_space<vmem>>, %arg4: memref<16x128xf32, #tpu.memory_space<vmem>>) attributes {dimension_semantics = [], scalar_prefetch = 0 : i64, scratch_operands = 0 : i64, tpu.core_type = #tpu.core_type<tc>} {
    %c0 = arith.constant 0 : index
    %c0_0 = arith.constant 0 : index
    %0 = vector.load %arg0[%c0, %c0_0] : memref<16x72xbf16, #tpu.memory_space<vmem>>, vector<16x72xbf16>
    %c0_1 = arith.constant 0 : index
    %c0_2 = arith.constant 0 : index
    %1 = vector.load %arg1[%c0_1, %c0_2] : memref<72x128xbf16, #tpu.memory_space<vmem>>, vector<72x128xbf16>
    %cst = arith.constant dense<0.000000e+00> : vector<16x128xf32>
    %2 = tpu.matmul %0, %1, %cst {dimension_numbers = #tpu.dot_dimension_numbers<[1], [0], [0], [1], [0, 0, 1, 1], [], []>} : vector<16x72xbf16>, vector<72x128xbf16>, vector<16x128xf32> -> vector<16x128xf32>
    %cst_3 = arith.constant dense<0.000000e+00> : vector<128xf32>
    %3 = vector.multi_reduction <add>, %2, %cst_3 [0] : vector<16x128xf32> to vector<128xf32>
    %4 = vector.shape_cast %3 : vector<128xf32> to vector<1x128xf32>
    %5 = arith.mulf %2, %2 : vector<16x128xf32>
    %cst_4 = arith.constant dense<0.000000e+00> : vector<128xf32>
    %6 = vector.multi_reduction <add>, %5, %cst_4 [0] : vector<16x128xf32> to vector<128xf32>
    %7 = vector.shape_cast %6 : vector<128xf32> to vector<1x128xf32>
    %cst_5 = arith.constant 6.250000e-02 : f32
    %8 = vector.broadcast %cst_5 : f32 to vector<1x128xf32>
    %9 = arith.mulf %4, %8 : vector<1x128xf32>
    %cst_6 = arith.constant 6.250000e-02 : f32
    %10 = vector.broadcast %cst_6 : f32 to vector<1x128xf32>
    %11 = arith.mulf %7, %10 : vector<1x128xf32>
    %12 = arith.mulf %9, %9 : vector<1x128xf32>
    %13 = arith.subf %11, %12 : vector<1x128xf32>
    %cst_7 = arith.constant 0.000000e+00 : f32
    %14 = vector.broadcast %cst_7 : f32 to vector<1x128xf32>
    %15 = arith.maximumf %13, %14 : vector<1x128xf32>
    %cst_8 = arith.constant 9.99999974E-6 : f32
    %16 = vector.broadcast %cst_8 : f32 to vector<1x128xf32>
    %17 = arith.addf %15, %16 : vector<1x128xf32>
    %18 = math.rsqrt %17 : vector<1x128xf32>
    %c0_9 = arith.constant 0 : index
    %c0_10 = arith.constant 0 : index
    %19 = vector.load %arg2[%c0_9, %c0_10] : memref<1x128xf32, #tpu.memory_space<vmem>>, vector<1x128xf32>
    %20 = arith.mulf %19, %18 : vector<1x128xf32>
    %c0_11 = arith.constant 0 : index
    %c0_12 = arith.constant 0 : index
    %21 = vector.load %arg3[%c0_11, %c0_12] : memref<1x128xf32, #tpu.memory_space<vmem>>, vector<1x128xf32>
    %22 = arith.mulf %9, %20 : vector<1x128xf32>
    %23 = arith.subf %21, %22 : vector<1x128xf32>
    %24 = vector.broadcast %20 : vector<1x128xf32> to vector<16x128xf32>
    %25 = arith.mulf %2, %24 : vector<16x128xf32>
    %26 = vector.broadcast %23 : vector<1x128xf32> to vector<16x128xf32>
    %27 = arith.addf %25, %26 : vector<16x128xf32>
    %cst_13 = arith.constant 0.000000e+00 : f32
    %28 = vector.broadcast %cst_13 : f32 to vector<16x128xf32>
    %29 = arith.maximumf %27, %28 : vector<16x128xf32>
    %c0_14 = arith.constant 0 : index
    %c0_15 = arith.constant 0 : index
    %30 = vector.load %arg4[%c0_14, %c0_15] : memref<16x128xf32, #tpu.memory_space<vmem>>, vector<16x128xf32>
    tpu.vector_store %arg4[%c0_14, %c0_15], %29 {strides = array<i32>} : memref<16x128xf32, #tpu.memory_space<vmem>>, vector<16x128xf32>,
    return
  }
}

</mosaic_0001>

<bundles_post_ra>
// kernel: vae_gst_forward.4
= control target key start
LH: loop header
LB: loop body
LE: loop exit
PB: predicated region body
PF: predicated region fallthrough
CT: control target
= control target key end

     0   :  { %vm150_vm0 = vcmask 293888   ;;  %vm199_vm1 = vcmask 1041408   ;;  %s1175_s1 = inlined_call_operand.vmem [shape: bf16[36,128], index: 1, kind: input, shape index: {}]   ;;  %s1176_s0 = inlined_call_operand.vmem [shape: bf16[256,36], index: 0, kind: input, shape index: {}]   ;;  %s1177_s2 = inlined_call_operand.vmem [shape: f32[1,128], index: 2, kind: input, shape index: {}]   ;;  %s1178_s3 = inlined_call_operand.vmem [shape: f32[1,128], index: 3, kind: input, shape index: {}]   ;;  %s1179_s4 = inlined_call_operand.vmem [shape: f32[256,128], index: 4, kind: output, shape index: {}]  }
   0x1   :  { %v726_v0 = vld [vmem:[%s1175_s1] sm:$0xff]   ;;  %v727_v1 = vld [vmem:[%s1175_s1 + $0x8] sm:$0xff]   ;;  %v728_v2 = vld [vmem:[%s1175_s1 + $0x10] ss:$0 sps:$4 sm:$0x33]  }
   0x2   :  { %680 = vmatprep.subr.bf16.mxu0 %v726_v0  ;;  %v729_v3 = vld [vmem:[%s1176_s0] sm:$0xff]   ;;  %718 = vmatprep.subr.bf16.mxu1 %v726_v0  ;;  %v201_v4 = vsel %vm199_vm1, %v728_v2, 0  ;;  %v730_v5 = vld [vmem:[%s1176_s0 + $0x8] sm:$0xff]   ;;  %v731_v6 = vld [vmem:[%s1176_s0 + $0x10] sm:$0xff]  }
   0x3   :  { %681 = vmatpush3.bf16.msra.mxu0 %v726_v0  ;;  %721 = vmatpush3.bf16.msra.mxu1 %v726_v0  ;;  %v737_v7 = vld [vmem:[%s1176_s0 + $0x40] sm:$0xff]   ;;  %v738_v8 = vld [vmem:[%s1176_s0 + $0x48] sm:$0xff]   ;;  %v739_v9 = vld [vmem:[%s1176_s0 + $0x50] sm:$0xff]  }
   0x4   :  { %682 = vmatprep.subr.bf16.mxu0 %v727_v1  ;;  %686 = vmatprep.mubr.msk.bf16.mxu0 %vm150_vm0, %v729_v3  ;;  %v732_v10 = vld [vmem:[%s1176_s0 + $0x18] sm:$0xff]   ;;  %v733_v12 = vld [vmem:[%s1176_s0 + $0x20] sm:$0xff]   ;;  %v734_v14 = vld [vmem:[%s1176_s0 + $0x28] sm:$0xff]  }
   0x5   :  { %719 = vmatprep.subr.bf16.mxu1 %v727_v1  ;;  %702 = vmatprep.mubr.msk.bf16.mxu1 %vm150_vm0, %v737_v7  ;;  %v740_v11 = vld [vmem:[%s1176_s0 + $0x58] sm:$0xff]   ;;  %v741_v13 = vld [vmem:[%s1176_s0 + $0x60] sm:$0xff]   ;;  %v742_v15 = vld [vmem:[%s1176_s0 + $0x68] sm:$0xff]  }
   0x6   :  { %v735_v16 = vld [vmem:[%s1176_s0 + $0x30] sm:$0xff]   ;;  %v736_v18 = vld [vmem:[%s1176_s0 + $0x38] sm:$0xff]  }
   0x7   :  { %683 = vmatpush3.bf16.msra.mxu0 %v727_v1  ;;  %722 = vmatpush3.bf16.msra.mxu1 %v727_v1  ;;  %v743_v17 = vld [vmem:[%s1176_s0 + $0x70] sm:$0xff]   ;;  %v744_v19 = vld [vmem:[%s1176_s0 + $0x78] sm:$0xff]  }
   0x8   :  { %724 = vmatprep.subr.msk.bf16.mxu0 %vm199_vm1, %v728_v2  ;;  %725 = vmatprep.subr.msk.bf16.mxu1 %vm199_vm1, %v728_v2 }
   0xb   :  { %685 = vmatpush3.bf16.msra.mxu0 %v201_v4  ;;  %723 = vmatpush3.bf16.msra.mxu1 %v201_v4 }
   0xe   :  { %687 = vmatmul.mubr.msk.bf16.vlgmr.msra.gmra.mrb[0].mxu0 %vm150_vm0, %v730_v5  ;;  %703 = vmatmul.mubr.msk.bf16.vlgmr.msra.gmra.mrb[0].mxu1 %vm150_vm0, %v738_v8 }
   0xf   :  { %690 = vmatprep.mubr.msk.bf16.mxu0 %vm150_vm0, %v731_v6  ;;  %706 = vmatprep.mubr.msk.bf16.mxu1 %vm150_vm0, %v739_v9 }
  0x16   :  { %691 = vmatmul.mubr.msk.bf16.gmra.mrb[4].mxu0 %vm150_vm0, %v732_v10  ;;  %707 = vmatmul.mubr.msk.bf16.gmra.mrb[4].mxu1 %vm150_vm0, %v740_v11 }
  0x17   :  { %694 = vmatprep.mubr.msk.bf16.mxu0 %vm150_vm0, %v733_v12  ;;  %710 = vmatprep.mubr.msk.bf16.mxu1 %vm150_vm0, %v741_v13 }
  0x1e   :  { %695 = vmatmul.mubr.msk.bf16.gmra.mrb[8].mxu0 %vm150_vm0, %v734_v14  ;;  %711 = vmatmul.mubr.msk.bf16.gmra.mrb[8].mxu1 %vm150_vm0, %v742_v15 }
  0x1f   :  { %698 = vmatprep.mubr.msk.bf16.mxu0 %vm150_vm0, %v735_v16  ;;  %714 = vmatprep.mubr.msk.bf16.mxu1 %vm150_vm0, %v743_v17 }
  0x26   :  { %699 = vmatmul.mubr.msk.bf16.gmra.mrb[12].mxu0 %vm150_vm0, %v736_v18  ;;  %715 = vmatmul.mubr.msk.bf16.gmra.mrb[12].mxu1 %vm150_vm0, %v744_v19 }
  0xe1   :  { %v845_v20 = vpop.f32.mrb[0].mxu0  ;;  %v847_v21 = vpop.f32.mrb[0].mxu1 }
  0xe2   :  { %v849_v22 = vpop.f32.mrb[1].mxu0  ;;  %v851_v23 = vpop.f32.mrb[1].mxu1  ;;  %v403_v31 = vmul.f32 %v845_v20, %v845_v20 }
  0xe3   :  { %v853_v24 = vpop.f32.mrb[2].mxu0  ;;  %v855_v25 = vpop.f32.mrb[2].mxu1  ;;  %v401_v28 = vmul.f32 %v849_v22, %v849_v22 }
  0xe4   :  { %v857_v26 = vpop.f32.mrb[3].mxu0  ;;  %v859_v27 = vpop.f32.mrb[3].mxu1  ;;  %v404_v34 = vmul.f32 %v853_v24, %v853_v24 }
  0xe5   :  { %v364_v29 = vadd.f32 %v857_v26, %v849_v22  ;;  %v402_v30 = vmul.f32 %v857_v26, %v857_v26 }
  0xe7   :  { %v365_v32 = vadd.f32 %v845_v20, %v364_v29  ;;  %v433_v33 = vadd.f32 %v402_v30, %v401_v28 }
  0xe9   :  { %v434_v35 = vadd.f32 %v433_v33, %v403_v31  ;;  %v872_v36 = vpop.f32.mrb[4].mxu0  ;;  %v366_v37 = vadd.f32 %v853_v24, %v365_v32  ;;  %v875_v38 = vpop.f32.mrb[4].mxu1 }
  0xea   :  { %v877_v39 = vpop.f32.mrb[5].mxu0  ;;  %v879_v40 = vpop.f32.mrb[5].mxu1  ;;  %v407_v51 = vmul.f32 %v872_v36, %v872_v36 }
  0xeb   :  { %v367_v41 = vadd.f32 %v366_v37, %v877_v39  ;;  %v405_v42 = vmul.f32 %v877_v39, %v877_v39  ;;  %v435_v43 = vadd.f32 %v434_v35, %v404_v34  ;;  %v884_v44 = vpop.f32.mrb[6].mxu0  ;;  %v886_v45 = vpop.f32.mrb[6].mxu1 }
  0xec   :  { %v888_v46 = vpop.f32.mrb[7].mxu0  ;;  %v890_v47 = vpop.f32.mrb[7].mxu1  ;;  %v408_v54 = vmul.f32 %v884_v44, %v884_v44 }
  0xed   :  { %v436_v48 = vadd.f32 %v435_v43, %v405_v42  ;;  %v368_v49 = vadd.f32 %v367_v41, %v888_v46  ;;  %v406_v50 = vmul.f32 %v888_v46, %v888_v46 }
  0xef   :  { %v369_v52 = vadd.f32 %v872_v36, %v368_v49  ;;  %v437_v53 = vadd.f32 %v436_v48, %v406_v50  ;;  %v417_v49 = vmul.f32 %v851_v23, %v851_v23 }
  0xf1   :  { %v438_v55 = vadd.f32 %v437_v53, %v407_v51  ;;  %v900_v56 = vpop.f32.mrb[8].mxu0  ;;  %v370_v57 = vadd.f32 %v884_v44, %v369_v52  ;;  %v903_v58 = vpop.f32.mrb[8].mxu1 }
  0xf2   :  { %v905_v59 = vpop.f32.mrb[9].mxu0  ;;  %v907_v60 = vpop.f32.mrb[9].mxu1  ;;  %v411_v7 = vmul.f32 %v900_v56, %v900_v56 }
  0xf3   :  { %v371_v61 = vadd.f32 %v370_v57, %v905_v59  ;;  %v409_v62 = vmul.f32 %v905_v59, %v905_v59  ;;  %v439_v63 = vadd.f32 %v438_v55, %v408_v54  ;;  %v912_v0 = vpop.f32.mrb[10].mxu0  ;;  %v914_v1 = vpop.f32.mrb[10].mxu1  ;;  %v418_v54 = vmul.f32 %v859_v27, %v859_v27 }
  0xf4   :  { %v916_v2 = vpop.f32.mrb[11].mxu0  ;;  %v918_v3 = vpop.f32.mrb[11].mxu1  ;;  %v412_v10 = vmul.f32 %v912_v0, %v912_v0  ;;  %v419_v55 = vmul.f32 %v847_v21, %v847_v21 }
  0xf5   :  { %v440_v4 = vadd.f32 %v439_v63, %v409_v62  ;;  %v372_v5 = vadd.f32 %v371_v61, %v916_v2  ;;  %v410_v6 = vmul.f32 %v916_v2, %v916_v2  ;;  %v420_v62 = vmul.f32 %v855_v25, %v855_v25 }
  0xf7   :  { %v373_v8 = vadd.f32 %v900_v56, %v372_v5  ;;  %v441_v9 = vadd.f32 %v440_v4, %v410_v6  ;;  %v421_v5 = vmul.f32 %v879_v40, %v879_v40 }
  0xf9   :  { %v442_v11 = vadd.f32 %v441_v9, %v411_v7  ;;  %v928_v12 = vpop.f32.mrb[12].mxu0  ;;  %v374_v13 = vadd.f32 %v912_v0, %v373_v8  ;;  %v931_v14 = vpop.f32.mrb[12].mxu1 }
  0xfa   :  { %v933_v15 = vpop.f32.mrb[13].mxu0  ;;  %v935_v16 = vpop.f32.mrb[13].mxu1  ;;  %v415_v35 = vmul.f32 %v928_v12, %v928_v12 }
  0xfb   :  { %v375_v17 = vadd.f32 %v374_v13, %v933_v15  ;;  %v413_v18 = vmul.f32 %v933_v15, %v933_v15  ;;  %v443_v19 = vadd.f32 %v442_v11, %v412_v10  ;;  %v940_v28 = vpop.f32.mrb[14].mxu0  ;;  %v942_v29 = vpop.f32.mrb[14].mxu1  ;;  %v422_v10 = vmul.f32 %v890_v47, %v890_v47 }
  0xfc   :  { %v944_v30 = vpop.f32.mrb[15].mxu0  ;;  %v946_v31 = vpop.f32.mrb[15].mxu1  ;;  %v416_v42 = vmul.f32 %v940_v28, %v940_v28  ;;  %v423_v11 = vmul.f32 %v875_v38, %v875_v38 }
  0xfd   :  { %v444_v32 = vadd.f32 %v443_v19, %v413_v18  ;;  %v376_v33 = vadd.f32 %v375_v17, %v944_v30  ;;  %v414_v34 = vmul.f32 %v944_v30, %v944_v30  ;;  %v424_v18 = vmul.f32 %v886_v45, %v886_v45 }
  0xff   :  { %v377_v37 = vadd.f32 %v928_v12, %v376_v33  ;;  %v445_v41 = vadd.f32 %v444_v32, %v414_v34  ;;  %v425_v33 = vmul.f32 %v907_v60, %v907_v60 }
 0x101   :  { %v446_v43 = vadd.f32 %v445_v41, %v415_v35  ;;  %v378_v48 = vadd.f32 %v940_v28, %v377_v37 }
 0x103   :  { %v379_v50 = vadd.f32 %v378_v48, %v851_v23  ;;  %v447_v51 = vadd.f32 %v446_v43, %v416_v42  ;;  %v426_v42 = vmul.f32 %v918_v3, %v918_v3  ;;  %v427_v43 = vmul.f32 %v903_v58, %v903_v58 }
 0x105   :  { %v448_v52 = vadd.f32 %v447_v51, %v417_v49  ;;  %v380_v53 = vadd.f32 %v379_v50, %v859_v27  ;;  %v428_v50 = vmul.f32 %v914_v1, %v914_v1 }
 0x107   :  { %v381_v57 = vadd.f32 %v847_v21, %v380_v53  ;;  %v449_v61 = vadd.f32 %v448_v52, %v418_v54  ;;  %v429_v53 = vmul.f32 %v935_v16, %v935_v16 }
 0x109   :  { %v450_v63 = vadd.f32 %v449_v61, %v419_v55  ;;  %v382_v4 = vadd.f32 %v855_v25, %v381_v57 }
 0x10b   :  { %v383_v6 = vadd.f32 %v382_v4, %v879_v40  ;;  %v451_v7 = vadd.f32 %v450_v63, %v420_v62  ;;  %v430_v62 = vmul.f32 %v946_v31, %v946_v31  ;;  %v431_v63 = vmul.f32 %v931_v14, %v931_v14 }
 0x10d   :  { %v452_v8 = vadd.f32 %v451_v7, %v421_v5  ;;  %v384_v9 = vadd.f32 %v383_v6, %v890_v47  ;;  %v432_v6 = vmul.f32 %v942_v29, %v942_v29 }
 0x10f   :  { %v385_v13 = vadd.f32 %v875_v38, %v384_v9  ;;  %v453_v17 = vadd.f32 %v452_v8, %v422_v10 }
 0x111   :  { %v454_v19 = vadd.f32 %v453_v17, %v423_v11  ;;  %v386_v32 = vadd.f32 %v886_v45, %v385_v13 }
 0x113   :  { %v387_v34 = vadd.f32 %v386_v32, %v907_v60  ;;  %v455_v35 = vadd.f32 %v454_v19, %v424_v18 }
 0x115   :  { %v456_v37 = vadd.f32 %v455_v35, %v425_v33  ;;  %v388_v41 = vadd.f32 %v387_v34, %v918_v3 }
 0x117   :  { %v389_v48 = vadd.f32 %v903_v58, %v388_v41  ;;  %v457_v49 = vadd.f32 %v456_v37, %v426_v42 }
 0x119   :  { %v458_v51 = vadd.f32 %v457_v49, %v427_v43  ;;  %v390_v52 = vadd.f32 %v914_v1, %v389_v48 }
 0x11b   :  { %v391_v54 = vadd.f32 %v390_v52, %v935_v16  ;;  %v459_v55 = vadd.f32 %v458_v51, %v428_v50  ;;  %v483_v52 = vlaneseq }
 0x11d   :  { %v460_v57 = vadd.f32 %v459_v55, %v429_v53  ;;  %v392_v61 = vadd.f32 %v391_v54, %v946_v31  ;;  %v484_v53 = vshrl.u32 %v483_v52, 7  ;;  %v477_v54 = vld [vmem:[%s1177_s2] sm:$0x1] }
 0x11f   :  { %v393_v4 = vadd.f32 %v931_v14, %v392_v61  ;;  %v461_v5 = vadd.f32 %v460_v57, %v430_v62  ;;  %v485_v55 = vsub.s32 0, %v484_v53  ;;  %v479_v62 = vld [vmem:[%s1178_s3] sm:$0x1] }
 0x121   :  { %v394_v7 = vadd.f32 %v942_v29, %v393_v4  ;;  %v462_v8 = vadd.f32 %v461_v5, %v431_v63 }
 0x123   :  { %v395_v9 = vrot.slane %v394_v7, 4  ;;  %v463_v10 = vadd.f32 %v462_v8, %v432_v6 }
 0x125   :  { %v396_v11 = vadd.f32 %v395_v9, %v394_v7  ;;  %v464_v13 = vrot.slane %v463_v10, 4 }
 0x127   :  { %v397_v17 = vrot.slane %v396_v11, 2  ;;  %v465_v18 = vadd.f32 %v464_v13, %v463_v10 }
 0x129   :  { %v398_v19 = vadd.f32 %v397_v17, %v396_v11  ;;  %v466_v32 = vrot.slane %v465_v18, 2 }
 0x12b   :  { %v399_v33 = vrot.slane %v398_v19, 1  ;;  %v467_v34 = vadd.f32 %v466_v32, %v465_v18 }
 0x12d   :  { %v400_v35 = vadd.f32 %v399_v33, %v398_v19  ;;  %v468_v37 = vrot.slane %v467_v34, 1 }
 0x12f   :  { %v469_v41 = vadd.f32 %v468_v37, %v467_v34  ;;  %v470_v42 = vmul.f32 0.00390625, %v400_v35 }
 0x131   :  { %v471_v43 = vmul.f32 0.00390625, %v469_v41  ;;  %v472_v48 = vmul.f32 %v470_v42, %v470_v42 }
 0x133   :  { %v473_v49 = vsub.f32 %v471_v43, %v472_v48 }
 0x135   :  { %v474_v50 = vmax.f32 %v473_v49, 0.0 }
 0x137   :  { %v475_v51 = vadd.f32 1e-05, %v474_v50 }
 0x139   :  { %745 = vrsqrt.f32 %v475_v51 }
 0x143   :  { %v746_v57 = vpop.eup %745 }
 0x144   :  { %v478_v61 = vmul.f32 %v746_v57, %v477_v54 }
 0x146   :  { %v480_v63 = vmul.f32 %v478_v61, %v470_v42  ;;  %v486_v4 = vrot.slane %v478_v61, %v485_v55 }
 0x148   :  { %v481_v5 = vsub.f32 %v479_v62, %v480_v63  ;;  %v488_v6 = vmul.f32 %v486_v4, %v849_v22  ;;  %v489_v7 = vmul.f32 %v486_v4, %v857_v26  ;;  %v490_v8 = vmul.f32 %v845_v20, %v486_v4 }
 0x149   :  { %v491_v9 = vmul.f32 %v853_v24, %v486_v4  ;;  %v492_v10 = vmul.f32 %v486_v4, %v877_v39  ;;  %v493_v11 = vmul.f32 %v486_v4, %v888_v46  ;;  %v494_v13 = vmul.f32 %v872_v36, %v486_v4 }
 0x14a   :  { %v495_v17 = vmul.f32 %v884_v44, %v486_v4  ;;  %v496_v18 = vmul.f32 %v486_v4, %v905_v59  ;;  %v497_v19 = vmul.f32 %v486_v4, %v916_v2  ;;  %v498_v22 = vmul.f32 %v900_v56, %v486_v4 }
 0x14b   :  { %v499_v26 = vmul.f32 %v912_v0, %v486_v4  ;;  %v500_v20 = vmul.f32 %v486_v4, %v933_v15  ;;  %v501_v24 = vmul.f32 %v486_v4, %v944_v30  ;;  %v502_v39 = vmul.f32 %v928_v12, %v486_v4 }
 0x14c   :  { %v503_v46 = vmul.f32 %v940_v28, %v486_v4  ;;  %v504_v36 = vmul.f32 %v486_v4, %v851_v23  ;;  %v505_v44 = vmul.f32 %v486_v4, %v859_v27  ;;  %v506_v59 = vmul.f32 %v847_v21, %v486_v4 }
 0x14d   :  { %v507_v2 = vmul.f32 %v855_v25, %v486_v4  ;;  %v508_v56 = vmul.f32 %v486_v4, %v879_v40  ;;  %v509_v0 = vmul.f32 %v486_v4, %v890_v47  ;;  %v510_v15 = vmul.f32 %v875_v38, %v486_v4 }
 0x14e   :  { %v511_v30 = vmul.f32 %v886_v45, %v486_v4  ;;  %v512_v12 = vmul.f32 %v486_v4, %v907_v60  ;;  %v513_v28 = vmul.f32 %v486_v4, %v918_v3  ;;  %v514_v23 = vmul.f32 %v903_v58, %v486_v4 }
 0x14f   :  { %v515_v27 = vmul.f32 %v914_v1, %v486_v4  ;;  %v516_v21 = vmul.f32 %v486_v4, %v935_v16  ;;  %v517_v25 = vmul.f32 %v486_v4, %v946_v31  ;;  %v518_v40 = vmul.f32 %v931_v14, %v486_v4 }
 0x150   :  { %v519_v47 = vmul.f32 %v942_v29, %v486_v4  ;;  %v524_v32 = vrot.slane %v481_v5, %v485_v55 }
 0x152   :  { %v526_v38 = vadd.f32 %v524_v32, %v488_v6  ;;  %v527_v33 = vadd.f32 %v524_v32, %v489_v7  ;;  %v528_v45 = vadd.f32 %v524_v32, %v490_v8  ;;  %v529_v34 = vadd.f32 %v524_v32, %v491_v9 }
 0x153   :  { %v530_v60 = vadd.f32 %v524_v32, %v492_v10  ;;  %v531_v35 = vadd.f32 %v524_v32, %v493_v11  ;;  %v532_v3 = vadd.f32 %v524_v32, %v494_v13  ;;  %v533_v37 = vadd.f32 %v524_v32, %v495_v17 }
 0x154   :  { %v534_v58 = vadd.f32 %v524_v32, %v496_v18  ;;  %v535_v41 = vadd.f32 %v524_v32, %v497_v19  ;;  %v536_v1 = vadd.f32 %v524_v32, %v498_v22  ;;  %v537_v42 = vadd.f32 %v524_v32, %v499_v26 }
 0x155   :  { %v538_v16 = vadd.f32 %v524_v32, %v500_v20  ;;  %v539_v43 = vadd.f32 %v524_v32, %v501_v24  ;;  %v540_v31 = vadd.f32 %v524_v32, %v502_v39  ;;  %v541_v48 = vadd.f32 %v524_v32, %v503_v46 }
 0x156   :  { %v542_v14 = vadd.f32 %v524_v32, %v504_v36  ;;  %v543_v49 = vadd.f32 %v524_v32, %v505_v44  ;;  %v544_v29 = vadd.f32 %v524_v32, %v506_v59  ;;  %v545_v50 = vadd.f32 %v524_v32, %v507_v2 }
 0x157   :  { %v1043_v51 = vadd.f32 %v524_v32, %v508_v56  ;;  %v1045_v52 = vadd.f32 %v524_v32, %v509_v0  ;;  %v1047_v53 = vadd.f32 %v524_v32, %v510_v15  ;;  %v1049_v54 = vadd.f32 %v524_v32, %v511_v30 }
 0x158   :  { %v1051_v55 = vadd.f32 %v524_v32, %v512_v12  ;;  %v1053_v57 = vadd.f32 %v524_v32, %v513_v28  ;;  %v1055_v61 = vadd.f32 %v524_v32, %v514_v23  ;;  %v1057_v62 = vadd.f32 %v524_v32, %v515_v27 }
 0x159   :  { %v1059_v63 = vadd.f32 %v524_v32, %v516_v21  ;;  %v1061_v4 = vadd.f32 %v524_v32, %v517_v25  ;;  %v1063_v5 = vadd.f32 %v524_v32, %v518_v40  ;;  %v1065_v6 = vadd.f32 %v524_v32, %v519_v47 }
 0x15a   :  { %v558_v7 = vmax.f32 %v526_v38, 0.0  ;;  %v559_v8 = vmax.f32 %v527_v33, 0.0  ;;  %v560_v9 = vmax.f32 %v528_v45, 0.0  ;;  %v561_v10 = vmax.f32 %v529_v34, 0.0 }
 0x15b   :  { %v562_v11 = vmax.f32 %v530_v60, 0.0  ;;  %v563_v13 = vmax.f32 %v531_v35, 0.0  ;;  %v564_v17 = vmax.f32 %v532_v3, 0.0  ;;  %v565_v18 = vmax.f32 %v533_v37, 0.0 }
 0x15c   :  { %v566_v19 = vmax.f32 %v534_v58, 0.0  ;;  %v567_v22 = vmax.f32 %v535_v41, 0.0  ;;  %v568_v26 = vmax.f32 %v536_v1, 0.0  ;;  %v569_v20 = vmax.f32 %v537_v42, 0.0  ;;  %590 = vst [vmem:[%s1179_s4] sm:$0xff] %v558_v7  ;;  %591 = vst [vmem:[%s1179_s4 + $0x8] sm:$0xff] %v559_v8 }
 0x15d   :  { %592 = vst [vmem:[%s1179_s4 + $0x10] sm:$0xff] %v560_v9  ;;  %593 = vst [vmem:[%s1179_s4 + $0x18] sm:$0xff] %v561_v10  ;;  %v570_v24 = vmax.f32 %v538_v16, 0.0  ;;  %v571_v39 = vmax.f32 %v539_v43, 0.0  ;;  %v572_v46 = vmax.f32 %v540_v31, 0.0  ;;  %v573_v36 = vmax.f32 %v541_v48, 0.0 }
 0x15e   :  { %594 = vst [vmem:[%s1179_s4 + $0x20] sm:$0xff] %v562_v11  ;;  %595 = vst [vmem:[%s1179_s4 + $0x28] sm:$0xff] %v563_v13  ;;  %v574_v44 = vmax.f32 %v542_v14, 0.0  ;;  %v575_v59 = vmax.f32 %v543_v49, 0.0  ;;  %v576_v2 = vmax.f32 %v544_v29, 0.0  ;;  %v577_v56 = vmax.f32 %v545_v50, 0.0 }
 0x15f   :  { %596 = vst [vmem:[%s1179_s4 + $0x30] sm:$0xff] %v564_v17  ;;  %597 = vst [vmem:[%s1179_s4 + $0x38] sm:$0xff] %v565_v18  ;;  %v578_v0 = vmax.f32 %v1043_v51, 0.0  ;;  %v579_v15 = vmax.f32 %v1045_v52, 0.0  ;;  %v580_v30 = vmax.f32 %v1047_v53, 0.0  ;;  %v581_v12 = vmax.f32 %v1049_v54, 0.0 }
 0x160   :  { %598 = vst [vmem:[%s1179_s4 + $0x40] sm:$0xff] %v566_v19  ;;  %599 = vst [vmem:[%s1179_s4 + $0x48] sm:$0xff] %v567_v22  ;;  %v582_v28 = vmax.f32 %v1051_v55, 0.0  ;;  %v583_v23 = vmax.f32 %v1053_v57, 0.0  ;;  %v584_v27 = vmax.f32 %v1055_v61, 0.0  ;;  %v585_v21 = vmax.f32 %v1057_v62, 0.0 }
 0x161   :  { %600 = vst [vmem:[%s1179_s4 + $0x50] sm:$0xff] %v568_v26  ;;  %601 = vst [vmem:[%s1179_s4 + $0x58] sm:$0xff] %v569_v20  ;;  %v586_v25 = vmax.f32 %v1059_v63, 0.0  ;;  %v587_v40 = vmax.f32 %v1061_v4, 0.0  ;;  %v588_v47 = vmax.f32 %v1063_v5, 0.0  ;;  %v589_v32 = vmax.f32 %v1065_v6, 0.0 }
 0x162   :  { %602 = vst [vmem:[%s1179_s4 + $0x60] sm:$0xff] %v570_v24  ;;  %603 = vst [vmem:[%s1179_s4 + $0x68] sm:$0xff] %v571_v39 }
 0x163   :  { %604 = vst [vmem:[%s1179_s4 + $0x70] sm:$0xff] %v572_v46  ;;  %605 = vst [vmem:[%s1179_s4 + $0x78] sm:$0xff] %v573_v36 }
 0x164   :  { %606 = vst [vmem:[%s1179_s4 + $0x80] sm:$0xff] %v574_v44  ;;  %607 = vst [vmem:[%s1179_s4 + $0x88] sm:$0xff] %v575_v59 }
 0x165   :  { %608 = vst [vmem:[%s1179_s4 + $0x90] sm:$0xff] %v576_v2  ;;  %609 = vst [vmem:[%s1179_s4 + $0x98] sm:$0xff] %v577_v56 }
 0x166   :  { %610 = vst [vmem:[%s1179_s4 + $0xa0] sm:$0xff] %v578_v0  ;;  %611 = vst [vmem:[%s1179_s4 + $0xa8] sm:$0xff] %v579_v15 }
 0x167   :  { %612 = vst [vmem:[%s1179_s4 + $0xb0] sm:$0xff] %v580_v30  ;;  %613 = vst [vmem:[%s1179_s4 + $0xb8] sm:$0xff] %v581_v12 }
 0x168   :  { %614 = vst [vmem:[%s1179_s4 + $0xc0] sm:$0xff] %v582_v28  ;;  %615 = vst [vmem:[%s1179_s4 + $0xc8] sm:$0xff] %v583_v23 }
 0x169   :  { %616 = vst [vmem:[%s1179_s4 + $0xd0] sm:$0xff] %v584_v27  ;;  %617 = vst [vmem:[%s1179_s4 + $0xd8] sm:$0xff] %v585_v21 }
 0x16a   :  { %618 = vst [vmem:[%s1179_s4 + $0xe0] sm:$0xff] %v586_v25  ;;  %619 = vst [vmem:[%s1179_s4 + $0xe8] sm:$0xff] %v587_v40 }
 0x16b   :  { %620 = vst [vmem:[%s1179_s4 + $0xf0] sm:$0xff] %v588_v47  ;;  %621 = vst [vmem:[%s1179_s4 + $0xf8] sm:$0xff] %v589_v32 }

// kernel: vae_gst_forward.5
= control target key start
LH: loop header
LB: loop body
LE: loop exit
PB: predicated region body
PF: predicated region fallthrough
CT: control target
= control target key end

     0   :  { %vm66_vm0 = vcmask 293888   ;;  %vm79_vm1 = vcmask 1041408   ;;  %v195_v56 = vlaneseq  ;;  %s389_s1 = inlined_call_operand.vmem [shape: bf16[36,128], index: 1, kind: input, shape index: {}]   ;;  %s390_s0 = inlined_call_operand.vmem [shape: bf16[64,36], index: 0, kind: input, shape index: {}]   ;;  %s391_s2 = inlined_call_operand.vmem [shape: f32[1,128], index: 2, kind: input, shape index: {}]   ;;  %s392_s3 = inlined_call_operand.vmem [shape: f32[1,128], index: 3, kind: input, shape index: {}]   ;;  %s393_s4 = inlined_call_operand.vmem [shape: f32[64,128], index: 4, kind: output, shape index: {}]  }
   0x1   :  { %v282_v0 = vld [vmem:[%s389_s1] sm:$0xff]   ;;  %v283_v1 = vld [vmem:[%s389_s1 + $0x8] sm:$0xff]   ;;  %v284_v2 = vld [vmem:[%s389_s1 + $0x10] ss:$0 sps:$4 sm:$0x33]  }
   0x2   :  { %260 = vmatprep.subr.bf16.mxu0 %v282_v0  ;;  %274 = vmatprep.subr.bf16.mxu1 %v282_v0  ;;  %v285_v3 = vld [vmem:[%s390_s0] sm:$0xff]   ;;  %v287_v4 = vld [vmem:[%s390_s0 + $0x10] sm:$0xff]   ;;  %v81_v5 = vsel %vm79_vm1, %v284_v2, 0  ;;  %v286_v6 = vld [vmem:[%s390_s0 + $0x8] sm:$0xff]   ;;  %v196_v57 = vshrl.u32 %v195_v56, 7 }
   0x3   :  { %261 = vmatpush3.bf16.msra.mxu0 %v282_v0  ;;  %277 = vmatpush3.bf16.msra.mxu1 %v282_v0  ;;  %v288_v7 = vld [vmem:[%s390_s0 + $0x18] sm:$0xff]   ;;  %v189_v58 = vld [vmem:[%s391_s2] sm:$0x1] }
   0x4   :  { %262 = vmatprep.subr.bf16.mxu0 %v283_v1  ;;  %275 = vmatprep.subr.bf16.mxu1 %v283_v1  ;;  %v197_v59 = vsub.s32 0, %v196_v57  ;;  %v191_v62 = vld [vmem:[%s392_s3] sm:$0x1] }
   0x5   :  { %266 = vmatprep.mubr.msk.bf16.mxu0 %vm66_vm0, %v285_v3  ;;  %270 = vmatprep.mubr.msk.bf16.mxu1 %vm66_vm0, %v287_v4 }
   0x7   :  { %263 = vmatpush3.bf16.msra.mxu0 %v283_v1  ;;  %278 = vmatpush3.bf16.msra.mxu1 %v283_v1 }
   0x8   :  { %280 = vmatprep.subr.msk.bf16.mxu0 %vm79_vm1, %v284_v2  ;;  %281 = vmatprep.subr.msk.bf16.mxu1 %vm79_vm1, %v284_v2 }
   0xb   :  { %265 = vmatpush3.bf16.msra.mxu0 %v81_v5  ;;  %279 = vmatpush3.bf16.msra.mxu1 %v81_v5 }
   0xe   :  { %267 = vmatmul.mubr.msk.bf16.vlgmr.msra.gmra.mrb[0].mxu0 %vm66_vm0, %v286_v6  ;;  %271 = vmatmul.mubr.msk.bf16.vlgmr.msra.gmra.mrb[0].mxu1 %vm66_vm0, %v288_v7 }
  0xe1   :  { %v341_v8 = vpop.f32.mrb[0].mxu0  ;;  %v343_v9 = vpop.f32.mrb[0].mxu1 }
  0xe2   :  { %v117_v10 = vpop.f32.mrb[1].mxu0  ;;  %v133_v11 = vpop.f32.mrb[1].mxu1  ;;  %v163_v19 = vmul.f32 %v341_v8, %v341_v8  ;;  %v167_v31 = vmul.f32 %v343_v9, %v343_v9 }
  0xe3   :  { %v269_v12 = vpop.f32.mrb[2].mxu0  ;;  %v345_v13 = vpop.f32.mrb[2].mxu1  ;;  %v161_v16 = vmul.f32 %v117_v10, %v117_v10  ;;  %v165_v25 = vmul.f32 %v133_v11, %v133_v11 }
  0xe4   :  { %v120_v14 = vpop.f32.mrb[3].mxu0  ;;  %v136_v15 = vpop.f32.mrb[3].mxu1  ;;  %v164_v22 = vmul.f32 %v269_v12, %v269_v12  ;;  %v168_v34 = vmul.f32 %v345_v13, %v345_v13 }
  0xe5   :  { %v148_v17 = vadd.f32 %v120_v14, %v117_v10  ;;  %v162_v18 = vmul.f32 %v120_v14, %v120_v14  ;;  %v166_v30 = vmul.f32 %v136_v15, %v136_v15 }
  0xe7   :  { %v149_v20 = vadd.f32 %v341_v8, %v148_v17  ;;  %v169_v21 = vadd.f32 %v162_v18, %v161_v16 }
  0xe9   :  { %v170_v23 = vadd.f32 %v169_v21, %v163_v19  ;;  %v150_v24 = vadd.f32 %v269_v12, %v149_v20 }
  0xeb   :  { %v151_v26 = vadd.f32 %v150_v24, %v133_v11  ;;  %v171_v27 = vadd.f32 %v170_v23, %v164_v22 }
  0xed   :  { %v172_v28 = vadd.f32 %v171_v27, %v165_v25  ;;  %v152_v29 = vadd.f32 %v151_v26, %v136_v15 }
  0xef   :  { %v153_v32 = vadd.f32 %v343_v9, %v152_v29  ;;  %v173_v33 = vadd.f32 %v172_v28, %v166_v30 }
  0xf1   :  { %v154_v35 = vadd.f32 %v345_v13, %v153_v32  ;;  %v174_v36 = vadd.f32 %v173_v33, %v167_v31 }
  0xf3   :  { %v155_v37 = vrot.slane %v154_v35, 4  ;;  %v175_v38 = vadd.f32 %v174_v36, %v168_v34 }
  0xf5   :  { %v156_v39 = vadd.f32 %v155_v37, %v154_v35  ;;  %v176_v40 = vrot.slane %v175_v38, 4 }
  0xf7   :  { %v157_v41 = vrot.slane %v156_v39, 2  ;;  %v177_v42 = vadd.f32 %v176_v40, %v175_v38 }
  0xf9   :  { %v158_v43 = vadd.f32 %v157_v41, %v156_v39  ;;  %v178_v44 = vrot.slane %v177_v42, 2 }
  0xfb   :  { %v159_v45 = vrot.slane %v158_v43, 1  ;;  %v179_v46 = vadd.f32 %v178_v44, %v177_v42 }
  0xfd   :  { %v160_v47 = vadd.f32 %v159_v45, %v158_v43  ;;  %v180_v48 = vrot.slane %v179_v46, 1 }
  0xff   :  { %v181_v49 = vadd.f32 %v180_v48, %v179_v46  ;;  %v182_v50 = vmul.f32 0.015625, %v160_v47 }
 0x101   :  { %v183_v51 = vmul.f32 0.015625, %v181_v49  ;;  %v184_v52 = vmul.f32 %v182_v50, %v182_v50 }
 0x103   :  { %v185_v53 = vsub.f32 %v183_v51, %v184_v52 }
 0x105   :  { %v186_v54 = vmax.f32 %v185_v53, 0.0 }
 0x107   :  { %v187_v55 = vadd.f32 1e-05, %v186_v54 }
 0x109   :  { %289 = vrsqrt.f32 %v187_v55 }
 0x113   :  { %v290_v60 = vpop.eup %289 }
 0x114   :  { %v190_v61 = vmul.f32 %v290_v60, %v189_v58 }
 0x116   :  { %v192_v63 = vmul.f32 %v190_v61, %v182_v50  ;;  %v198_v0 = vrot.slane %v190_v61, %v197_v59 }
 0x118   :  { %v193_v1 = vsub.f32 %v191_v62, %v192_v63  ;;  %v200_v2 = vmul.f32 %v198_v0, %v117_v10  ;;  %v201_v3 = vmul.f32 %v198_v0, %v120_v14  ;;  %v202_v4 = vmul.f32 %v341_v8, %v198_v0 }
 0x119   :  { %v203_v5 = vmul.f32 %v269_v12, %v198_v0  ;;  %v204_v6 = vmul.f32 %v198_v0, %v133_v11  ;;  %v205_v7 = vmul.f32 %v198_v0, %v136_v15  ;;  %v206_v16 = vmul.f32 %v343_v9, %v198_v0 }
 0x11a   :  { %v207_v17 = vmul.f32 %v345_v13, %v198_v0  ;;  %v212_v18 = vrot.slane %v193_v1, %v197_v59 }
 0x11c   :  { %v214_v19 = vadd.f32 %v212_v18, %v200_v2  ;;  %v215_v20 = vadd.f32 %v212_v18, %v201_v3  ;;  %v216_v21 = vadd.f32 %v212_v18, %v202_v4  ;;  %v217_v22 = vadd.f32 %v212_v18, %v203_v5 }
 0x11d   :  { %v218_v23 = vadd.f32 %v212_v18, %v204_v6  ;;  %v219_v24 = vadd.f32 %v212_v18, %v205_v7  ;;  %v220_v25 = vadd.f32 %v212_v18, %v206_v16  ;;  %v221_v26 = vadd.f32 %v212_v18, %v207_v17 }
 0x11e   :  { %v222_v10 = vmax.f32 %v214_v19, 0.0  ;;  %v223_v14 = vmax.f32 %v215_v20, 0.0  ;;  %v224_v27 = vmax.f32 %v216_v21, 0.0  ;;  %v225_v8 = vmax.f32 %v217_v22, 0.0 }
 0x11f   :  { %v226_v12 = vmax.f32 %v218_v23, 0.0  ;;  %v227_v11 = vmax.f32 %v219_v24, 0.0  ;;  %v228_v15 = vmax.f32 %v220_v25, 0.0  ;;  %v229_v28 = vmax.f32 %v221_v26, 0.0 }
 0x120   :  { %230 = vst [vmem:[%s393_s4] sm:$0xff] %v222_v10  ;;  %231 = vst [vmem:[%s393_s4 + $0x8] sm:$0xff] %v223_v14 }
 0x121   :  { %232 = vst [vmem:[%s393_s4 + $0x10] sm:$0xff] %v224_v27  ;;  %233 = vst [vmem:[%s393_s4 + $0x18] sm:$0xff] %v225_v8 }
 0x122   :  { %234 = vst [vmem:[%s393_s4 + $0x20] sm:$0xff] %v226_v12  ;;  %235 = vst [vmem:[%s393_s4 + $0x28] sm:$0xff] %v227_v11 }
 0x123   :  { %236 = vst [vmem:[%s393_s4 + $0x30] sm:$0xff] %v228_v15  ;;  %237 = vst [vmem:[%s393_s4 + $0x38] sm:$0xff] %v229_v28 }

// kernel: vae_gst_forward.6
= control target key start
LH: loop header
LB: loop body
LE: loop exit
PB: predicated region body
PF: predicated region fallthrough
CT: control target
= control target key end

     0   :  { %v199_v0 = vmov 0.0   ;;  %vm200_vm0 = vmmov 0   ;;  %vm65_vm1 = vcmask 1043456   ;;  %vm61_vm2 = vcmask 588800   ;;  %s256_s1 = inlined_call_operand.vmem [shape: bf16[72,128], index: 1, kind: input, shape index: {}]   ;;  %s257_s0 = inlined_call_operand.vmem [shape: bf16[16,72], index: 0, kind: input, shape index: {}]   ;;  %s258_s2 = inlined_call_operand.vmem [shape: f32[1,128], index: 2, kind: input, shape index: {}]   ;;  %s259_s3 = inlined_call_operand.vmem [shape: f32[1,128], index: 3, kind: input, shape index: {}]   ;;  %s260_s4 = inlined_call_operand.vmem [shape: f32[16,128], index: 4, kind: output, shape index: {}]  }
   0x1   :  { %175 = vmatprep.subr.bf16.mxu0 %v199_v0  ;;  %v191_v1 = vld [vmem:[%s256_s1] sm:$0xff]   ;;  %185 = vmatprep.mubr.msk.bf16.mxu0 %vm200_vm0, %v199_v0  ;;  %v192_v2 = vld [vmem:[%s256_s1 + $0x8] sm:$0xff]   ;;  %v193_v3 = vld [vmem:[%s256_s1 + $0x10] sm:$0xff]   ;;  %v139_v34 = vlaneseq }
   0x2   :  { %176 = vmatpush3.bf16.msra.mxu0 %v191_v1  ;;  %v194_v4 = vld [vmem:[%s256_s1 + $0x18] sm:$0xff]   ;;  %v195_v5 = vld [vmem:[%s256_s1 + $0x20] ss:$0 sps:$4 sm:$0xff]  }
   0x3   :  { %177 = vmatprep.subr.bf16.mxu0 %v199_v0  ;;  %v67_v6 = vsel %vm65_vm1, %v195_v5, 0  ;;  %v196_v7 = vld [vmem:[%s257_s0] sm:$0xff]   ;;  %v140_v35 = vshrl.u32 %v139_v34, 7 }
   0x4   :  { %v133_v36 = vld [vmem:[%s258_s2] sm:$0x1] }
   0x5   :  { %v141_v37 = vsub.s32 0, %v140_v35  ;;  %v135_v40 = vld [vmem:[%s259_s3] sm:$0x1] }
   0x6   :  { %178 = vmatpush3.bf16.msra.mxu0 %v192_v2 }
   0x7   :  { %179 = vmatprep.subr.bf16.mxu0 %v199_v0 }
   0xa   :  { %180 = vmatpush3.bf16.msra.mxu0 %v193_v3 }
   0xb   :  { %181 = vmatprep.subr.bf16.mxu0 %v199_v0 }
   0xe   :  { %182 = vmatpush3.bf16.msra.mxu0 %v194_v4 }
   0xf   :  { %183 = vmatprep.subr.bf16.mxu0 %v199_v0 }
  0x12   :  { %184 = vmatpush3.bf16.msra.mxu0 %v67_v6 }
  0x15   :  { %186 = vmatmul.mubr.msk.bf16.vlgmr.msra.gmra.mrb[0].mxu0 %vm61_vm2, %v196_v7 }
  0xe8   :  { %v103_v8 = vpop.f32.mrb[0].mxu0 }
  0xe9   :  { %v187_v9 = vpop.f32.mrb[1].mxu0  ;;  %v117_v11 = vmul.f32 %v103_v8, %v103_v8 }
  0xea   :  { %v106_v10 = vpop.f32.mrb[2].mxu0 }
  0xeb   :  { %v110_v12 = vadd.f32 %v106_v10, %v103_v8  ;;  %v118_v13 = vmul.f32 %v106_v10, %v106_v10  ;;  %v188_v14 = vpop.f32.mrb[3].mxu0 }
  0xed   :  { %v111_v15 = vrot.slane %v110_v12, 4  ;;  %v119_v16 = vadd.f32 %v118_v13, %v117_v11 }
  0xef   :  { %v112_v17 = vadd.f32 %v111_v15, %v110_v12  ;;  %v120_v18 = vrot.slane %v119_v16, 4 }
  0xf1   :  { %v113_v19 = vrot.slane %v112_v17, 2  ;;  %v121_v20 = vadd.f32 %v120_v18, %v119_v16 }
  0xf3   :  { %v114_v21 = vadd.f32 %v113_v19, %v112_v17  ;;  %v122_v22 = vrot.slane %v121_v20, 2 }
  0xf5   :  { %v115_v23 = vrot.slane %v114_v21, 1  ;;  %v123_v24 = vadd.f32 %v122_v22, %v121_v20 }
  0xf7   :  { %v116_v25 = vadd.f32 %v115_v23, %v114_v21  ;;  %v124_v26 = vrot.slane %v123_v24, 1 }
  0xf9   :  { %v125_v27 = vadd.f32 %v124_v26, %v123_v24  ;;  %v126_v28 = vmul.f32 0.0625, %v116_v25 }
  0xfb   :  { %v127_v29 = vmul.f32 0.0625, %v125_v27  ;;  %v128_v30 = vmul.f32 %v126_v28, %v126_v28 }
  0xfd   :  { %v129_v31 = vsub.f32 %v127_v29, %v128_v30 }
  0xff   :  { %v130_v32 = vmax.f32 %v129_v31, 0.0 }
 0x101   :  { %v131_v33 = vadd.f32 1e-05, %v130_v32 }
 0x103   :  { %197 = vrsqrt.f32 %v131_v33 }
 0x10d   :  { %v198_v38 = vpop.eup %197 }
 0x10e   :  { %v134_v39 = vmul.f32 %v198_v38, %v133_v36 }
 0x110   :  { %v136_v41 = vmul.f32 %v134_v39, %v126_v28  ;;  %v142_v42 = vrot.slane %v134_v39, %v141_v37 }
 0x112   :  { %v137_v43 = vsub.f32 %v135_v40, %v136_v41  ;;  %v144_v44 = vmul.f32 %v142_v42, %v103_v8  ;;  %v145_v45 = vmul.f32 %v142_v42, %v106_v10 }
 0x114   :  { %v150_v46 = vrot.slane %v137_v43, %v141_v37 }
 0x116   :  { %v152_v47 = vadd.f32 %v150_v46, %v144_v44  ;;  %v153_v48 = vadd.f32 %v150_v46, %v145_v45 }
 0x118   :  { %v154_v49 = vmax.f32 %v152_v47, 0.0  ;;  %v155_v50 = vmax.f32 %v153_v48, 0.0 }
 0x11a   :  { %156 = vst [vmem:[%s260_s4] sm:$0xff] %v154_v49  ;;  %157 = vst [vmem:[%s260_s4 + $0x8] sm:$0xff] %v155_v50 }

// kernel: vae_gst_forward.7
= control target key start
LH: loop header
LB: loop body
LE: loop exit
PB: predicated region body
PF: predicated region fallthrough
CT: control target
= control target key end

     0   :  { %vm2445_vm0 = vmmov 0   ;;  %s3292_s1 = inlined_call_operand.vmem [shape: bf16[256,384], index: 1, kind: input, shape index: {}]   ;;  %s3293_s0 = inlined_call_operand.vmem [shape: bf16[1,32,256], index: 0, kind: input, shape index: {}]   ;;  %s3294_s2 = inlined_call_operand.vmem [shape: f32[128,384], index: 2, kind: input, shape index: {}]   ;;  %s3295_s3 = inlined_call_operand.vmem [shape: f32[1,384], index: 3, kind: input, shape index: {}]   ;;  %s3296_s4 = inlined_call_operand.vmem [shape: f32[1,384], index: 4, kind: input, shape index: {}]   ;;  %s3297_s5 = inlined_call_operand.vmem [shape: f32[128,128], index: 5, kind: input, shape index: {}]   ;;  %s3298_s7 = inlined_call_operand.vmem [shape: f32[128,128], index: 7, kind: input, shape index: {}]   ;;  %s3299_s9 = inlined_call_operand.vmem [shape: f32[128,128], index: 9, kind: input, shape index: {}]   ;;  %s3300_s6 = inlined_call_operand.vmem [shape: f32[1,128], index: 6, kind: input, shape index: {}]   ;;  %s3301_s8 = inlined_call_operand.vmem [shape: f32[1,128], index: 8, kind: input, shape index: {}]   ;;  %s3302_s13 = inlined_call_operand.vmem [shape: f32[8,128], index: 13, kind: output, shape index: {1}]   ;;  %s3303_s14 = inlined_call_operand.vmem [shape: f32[8,128], index: 14, kind: output, shape index: {2}]   ;;  %s3304_s11 = inlined_call_operand.vmem [shape: f32[8,128], index: 11, kind: input, shape index: {}]   ;;  %s3305_s15 = inlined_call_operand.vmem [shape: f32[8,128], index: 15, kind: output, shape index: {3}]   ;;  %s3306_s10 = inlined_call_operand.vmem [shape: f32[1,128], index: 10, kind: input, shape index: {}]   ;;  %s3307_s12 = inlined_call_operand.vmem [shape: f32[8,128], index: 12, kind: output, shape index: {0}]  }
   0x1   :  { %v2331_v0 = vld [vmem:[%s3292_s1 + $0x4] ss:$12 sps:$4 sm:$0xff]   ;;  %v2333_v1 = vld [vmem:[%s3292_s1 + $0xc8] ss:$12 sps:$4 sm:$0xff]   ;;  %v2334_v2 = vld [vmem:[%s3292_s1] ss:$12 sps:$4 sm:$0xff]  }
   0x2   :  { %412 = vmatprep.subr.bf16.mxu0 %v2331_v0  ;;  %1640 = vmatprep.subr.bf16.mxu1 %v2333_v1  ;;  %v2335_v3 = vld [vmem:[%s3292_s1 + $0x8] ss:$12 sps:$4 sm:$0xff]   ;;  %v2338_v5 = vld [vmem:[%s3292_s1 + $0xe0] ss:$12 sps:$4 sm:$0xff]   ;;  %v2339_v6 = vld [vmem:[%s3292_s1 + $0x18] ss:$12 sps:$4 sm:$0xff]  }
   0x3   :  { %413 = vmatpush1.bf16.msra.mxu0 %v2334_v2  ;;  %v2336_v4 = vld [vmem:[%s3292_s1 + $0x1c] ss:$12 sps:$4 sm:$0xff]   ;;  %1641 = vmatpush3.bf16.msra.mxu1 %v2335_v3  ;;  %v2340_v7 = vld [vmem:[%s3292_s1 + $0x20] ss:$12 sps:$4 sm:$0xff]   ;;  %v2343_v9 = vld [vmem:[%s3292_s1 + $0xf8] ss:$12 sps:$4 sm:$0xff]  }
   0x4   :  { %414 = vmatprep.subr.bf16.mxu0 %v2336_v4  ;;  %1642 = vmatprep.subr.bf16.mxu1 %v2338_v5  ;;  %v2341_v8 = vld [vmem:[%s3292_s1 + $0x34] ss:$12 sps:$4 sm:$0xff]   ;;  %v2344_v10 = vld [vmem:[%s3292_s1 + $0x30] ss:$12 sps:$4 sm:$0xff]   ;;  %v2345_v11 = vld [vmem:[%s3292_s1 + $0x38] ss:$12 sps:$4 sm:$0xff]  }
   0x5   :  { %v2346_v12 = vld [vmem:[%s3292_s1 + $0x4c] ss:$12 sps:$4 sm:$0xff]   ;;  %v2348_v13 = vld [vmem:[%s3292_s1 + $0x110] ss:$12 sps:$4 sm:$0xff]   ;;  %v2349_v14 = vld [vmem:[%s3292_s1 + $0x48] ss:$12 sps:$4 sm:$0xff]  }
   0x6   :  { %v2350_v15 = vld [vmem:[%s3292_s1 + $0x50] ss:$12 sps:$4 sm:$0xff]   ;;  %v2353_v17 = vld [vmem:[%s3292_s1 + $0x128] ss:$12 sps:$4 sm:$0xff]   ;;  %v2354_v18 = vld [vmem:[%s3292_s1 + $0x60] ss:$12 sps:$4 sm:$0xff]  }
   0x7   :  { %415 = vmatpush1.bf16.msra.mxu0 %v2339_v6  ;;  %1643 = vmatpush3.bf16.msra.mxu1 %v2340_v7  ;;  %v2351_v16 = vld [vmem:[%s3292_s1 + $0x64] ss:$12 sps:$4 sm:$0xff]   ;;  %v2355_v19 = vld [vmem:[%s3292_s1 + $0x68] ss:$12 sps:$4 sm:$0xff]   ;;  %v2358_v21 = vld [vmem:[%s3292_s1 + $0x140] ss:$12 sps:$4 sm:$0xff]  }
   0x8   :  { %416 = vmatprep.subr.bf16.mxu0 %v2341_v8  ;;  %1644 = vmatprep.subr.bf16.mxu1 %v2343_v9  ;;  %v2356_v20 = vld [vmem:[%s3292_s1 + $0x7c] ss:$12 sps:$4 sm:$0xff]   ;;  %v2359_v22 = vld [vmem:[%s3292_s1 + $0x78] ss:$12 sps:$4 sm:$0xff]   ;;  %v2360_v23 = vld [vmem:[%s3292_s1 + $0x80] ss:$12 sps:$4 sm:$0xff]  }
   0x9   :  { %v2361_v24 = vld [vmem:[%s3292_s1 + $0x94] ss:$12 sps:$4 sm:$0xff]   ;;  %v2363_v25 = vld [vmem:[%s3292_s1 + $0x158] ss:$12 sps:$4 sm:$0xff]   ;;  %v2364_v26 = vld [vmem:[%s3292_s1 + $0x90] ss:$12 sps:$4 sm:$0xff]  }
   0xa   :  { %v2365_v27 = vld [vmem:[%s3292_s1 + $0x98] ss:$12 sps:$4 sm:$0xff]   ;;  %v2368_v29 = vld [vmem:[%s3292_s1 + $0x170] ss:$12 sps:$4 sm:$0xff]   ;;  %v2369_v30 = vld [vmem:[%s3292_s1 + $0xa8] ss:$12 sps:$4 sm:$0xff]  }
   0xb   :  { %417 = vmatpush1.bf16.msra.mxu0 %v2344_v10  ;;  %1645 = vmatpush3.bf16.msra.mxu1 %v2345_v11  ;;  %v2366_v28 = vld [vmem:[%s3292_s1 + $0xac] ss:$12 sps:$4 sm:$0xff]   ;;  %v2370_v31 = vld [vmem:[%s3292_s1 + $0xb0] ss:$12 sps:$4 sm:$0xff]   ;;  %v537_v35 = vld [vmem:[%s3294_s2 + $0x20] sm:$0xff] }
   0xc   :  { %418 = vmatprep.subr.bf16.mxu0 %v2346_v12  ;;  %1646 = vmatprep.subr.bf16.mxu1 %v2348_v13  ;;  %v2375_v32 = vld [vmem:[%s3293_s0 + $0x4] ss:$8 sps:$4 sm:$0xff]   ;;  %v536_v38 = vld [vmem:[%s3294_s2 + $0x18] sm:$0xff]  ;;  %v2648_v40 = vld [vmem:[%s3293_s0] ss:$8 sps:$4 sm:$0xff]  }
   0xd   :  { %v2371_v33 = vld [vmem:[%s3292_s1 + $0xc4] ss:$12 sps:$4 sm:$0xff]   ;;  %v534_v34 = vld [vmem:[%s3294_s2 + $0x8] sm:$0xff]  ;;  %497 = vmatprep.mubr.bf16.mxu1 %v2375_v32  ;;  %v540_v39 = vld [vmem:[%s3294_s2 + $0x38] sm:$0xff]  ;;  %444 = vmatprep.mubr.bf16.mxu0 %v2375_v32 }
   0xe   :  { %v2634_v36 = vpack.c.bf16 %v537_v35, %v534_v34  ;;  %v533_v37 = vld [vmem:[%s3294_s2] sm:$0xff]  ;;  %v543_v42 = vld [vmem:[%s3294_s2 + $0x50] sm:$0xff]  ;;  %v2377_v44 = vld [vmem:[%s3292_s1 + $0xdc] ss:$12 sps:$4 sm:$0xff]  }
   0xf   :  { %419 = vmatpush1.bf16.msra.mxu0 %v2349_v14  ;;  %1647 = vmatpush3.bf16.msra.mxu1 %v2350_v15  ;;  %v2376_v41 = vld [vmem:[%s3292_s1 + $0xc0] ss:$12 sps:$4 sm:$0xff]   ;;  %v2656_v43 = vpack.c.bf16 %v536_v38, %v533_v37  ;;  %v2662_v45 = vpack.c.bf16 %v543_v42, %v540_v39  ;;  %v539_v46 = vld [vmem:[%s3294_s2 + $0x30] sm:$0xff]  ;;  %v2379_v50 = vld [vmem:[%s3292_s1 + $0xd8] ss:$12 sps:$4 sm:$0xff]   ;;  %v2444_v42 = vmov 0.0|0.0  }
  0x10   :  { %420 = vmatprep.subr.bf16.mxu0 %v2351_v16  ;;  %1648 = vmatprep.subr.bf16.mxu1 %v2353_v17  ;;  %v542_v47 = vld [vmem:[%s3294_s2 + $0x48] sm:$0xff]  ;;  %v549_v49 = vld [vmem:[%s3294_s2 + $0x80] sm:$0xff]  ;;  %v548_v55 = vld [vmem:[%s3294_s2 + $0x78] sm:$0xff] }
  0x11   :  { %v546_v48 = vld [vmem:[%s3294_s2 + $0x68] sm:$0xff]  ;;  %v2681_v51 = vpack.c.bf16 %v542_v47, %v539_v46  ;;  %v2380_v52 = vld [vmem:[%s3292_s1 + $0xf4] ss:$12 sps:$4 sm:$0xff]   ;;  %v552_v56 = vld [vmem:[%s3294_s2 + $0x98] sm:$0xff] }
  0x12   :  { %v2687_v53 = vpack.c.bf16 %v549_v49, %v546_v48  ;;  %v545_v54 = vld [vmem:[%s3294_s2 + $0x60] sm:$0xff]  ;;  %v555_v57 = vld [vmem:[%s3294_s2 + $0xb0] sm:$0xff]  ;;  %v2383_v60 = vld [vmem:[%s3292_s1 + $0x10c] ss:$12 sps:$4 sm:$0xff]  }
  0x13   :  { %421 = vmatpush1.bf16.msra.mxu0 %v2354_v18  ;;  %1649 = vmatpush3.bf16.msra.mxu1 %v2355_v19  ;;  %v2382_v58 = vld [vmem:[%s3292_s1 + $0xf0] ss:$12 sps:$4 sm:$0xff]   ;;  %v2705_v59 = vpack.c.bf16 %v548_v55, %v545_v54  ;;  %v2711_v61 = vpack.c.bf16 %v555_v57, %v552_v56  ;;  %v554_v63 = vld [vmem:[%s3294_s2 + $0xa8] sm:$0xff]  ;;  %v561_v2 = vld [vmem:[%s3294_s2 + $0xe0] sm:$0xff]  ;;  %v2443_v18 = vmov 0.0  }
  0x14   :  { %422 = vmatprep.subr.bf16.mxu0 %v2356_v20  ;;  %1650 = vmatprep.subr.bf16.mxu1 %v2358_v21  ;;  %v551_v62 = vld [vmem:[%s3294_s2 + $0x90] sm:$0xff]  ;;  %v558_v1 = vld [vmem:[%s3294_s2 + $0xc8] sm:$0xff]  ;;  %v557_v7 = vld [vmem:[%s3294_s2 + $0xc0] sm:$0xff] }
  0x15   :  { %v2385_v0 = vld [vmem:[%s3292_s1 + $0x108] ss:$12 sps:$4 sm:$0xff]   ;;  %v2734_v4 = vpack.c.bf16 %v554_v63, %v551_v62  ;;  %v2386_v5 = vld [vmem:[%s3292_s1 + $0x124] ss:$12 sps:$4 sm:$0xff]   ;;  %v2740_v6 = vpack.c.bf16 %v561_v2, %v558_v1  ;;  %v560_v8 = vld [vmem:[%s3294_s2 + $0xd8] sm:$0xff] }
  0x16   :  { %v2731_v3 = vld [vmem:[%s3293_s0 + $0x14] ss:$8 sps:$4 sm:$0xff]   ;;  %v2752_v9 = vld [vmem:[%s3293_s0 + $0x10] ss:$8 sps:$4 sm:$0xff]   ;;  %v2388_v12 = vld [vmem:[%s3292_s1 + $0x120] ss:$12 sps:$4 sm:$0xff]   ;;  %v2765_v13 = vpack.c.bf16 %v560_v8, %v557_v7  ;;  %v121_v7 = vlaneseq }
  0x17   :  { %423 = vmatpush1.bf16.msra.mxu0 %v2359_v22  ;;  %1651 = vmatpush3.bf16.msra.mxu1 %v2360_v23  ;;  %v564_v10 = vld [vmem:[%s3294_s2 + $0xf8] sm:$0xff]  ;;  %v567_v11 = vld [vmem:[%s3294_s2 + $0x110] sm:$0xff]  ;;  %v566_v17 = vld [vmem:[%s3294_s2 + $0x108] sm:$0xff] }
  0x18   :  { %424 = vmatprep.subr.bf16.mxu0 %v2361_v24  ;;  %1652 = vmatprep.subr.bf16.mxu1 %v2363_v25  ;;  %v2389_v14 = vld [vmem:[%s3292_s1 + $0x13c] ss:$12 sps:$4 sm:$0xff]   ;;  %v2771_v15 = vpack.c.bf16 %v567_v11, %v564_v10  ;;  %v563_v16 = vld [vmem:[%s3294_s2 + $0xf0] sm:$0xff]  ;;  %v573_v20 = vld [vmem:[%s3294_s2 + $0x140] sm:$0xff]  ;;  %v122_v8 = vshrl.u32 %v121_v7, 7 }
  0x19   :  { %v570_v19 = vld [vmem:[%s3294_s2 + $0x128] sm:$0xff]  ;;  %v2391_v21 = vld [vmem:[%s3292_s1 + $0x138] ss:$12 sps:$4 sm:$0xff]   ;;  %v2790_v22 = vpack.c.bf16 %v566_v17, %v563_v16  ;;  %v2394_v23 = vld [vmem:[%s3292_s1 + $0x154] ss:$12 sps:$4 sm:$0xff]  }
  0x1a   :  { %v2796_v24 = vpack.c.bf16 %v573_v20, %v570_v19  ;;  %v569_v25 = vld [vmem:[%s3294_s2 + $0x120] sm:$0xff]  ;;  %v578_v34 = vld [vmem:[%s3294_s2 + $0x168] sm:$0xff]  ;;  %v535_v38 = vld [vmem:[%s3294_s2 + $0x10] sm:$0xff] }
  0x1b   :  { %425 = vmatpush1.bf16.msra.mxu0 %v2364_v26  ;;  %1653 = vmatpush3.bf16.msra.mxu1 %v2365_v27  ;;  %v572_v26 = vld [vmem:[%s3294_s2 + $0x138] sm:$0xff]  ;;  %v2400_v35 = vld [vmem:[%s3292_s1 + $0x168] ss:$12 sps:$4 sm:$0xff]   ;;  %v577_v2 = vld [vmem:[%s3294_s2 + $0x160] sm:$0xff] }
  0x1c   :  { %426 = vmatprep.subr.bf16.mxu0 %v2366_v28  ;;  %1654 = vmatprep.subr.bf16.mxu1 %v2368_v29  ;;  %v576_v27 = vld [vmem:[%s3294_s2 + $0x158] sm:$0xff]  ;;  %v579_v28 = vld [vmem:[%s3294_s2 + $0x170] sm:$0xff]  ;;  %v538_v39 = vld [vmem:[%s3294_s2 + $0x28] sm:$0xff] }
  0x1d   :  { %v2397_v29 = vld [vmem:[%s3292_s1 + $0x150] ss:$12 sps:$4 sm:$0xff]   ;;  %v2820_v32 = vpack.c.bf16 %v579_v28, %v576_v27  ;;  %v550_v49 = vld [vmem:[%s3294_s2 + $0x88] sm:$0xff]  ;;  %v119_v10 = vld [vmem:[%s3295_s3] sm:$0x7] }
  0x1e   :  { %v544_v46 = vld [vmem:[%s3294_s2 + $0x58] sm:$0xff]  ;;  %v547_v48 = vld [vmem:[%s3294_s2 + $0x70] sm:$0xff]  ;;  %v562_v56 = vld [vmem:[%s3294_s2 + $0xe8] sm:$0xff] }
  0x1f   :  { %427 = vmatpush1.bf16.msra.mxu0 %v2369_v30  ;;  %1655 = vmatpush3.bf16.msra.mxu1 %v2370_v31  ;;  %v2814_v30 = vpack.c.bf16 %v572_v26, %v569_v25  ;;  %v2398_v31 = vld [vmem:[%s3292_s1 + $0x16c] ss:$12 sps:$4 sm:$0xff]   ;;  %v559_v55 = vld [vmem:[%s3294_s2 + $0xd0] sm:$0xff] }
  0x20   :  { %428 = vmatprep.subr.bf16.mxu0 %v2371_v33  ;;  %2033 = vmatprep.subr.bf16.mxu1 %v2634_v36  ;;  %v575_v33 = vld [vmem:[%s3294_s2 + $0x150] sm:$0xff]  ;;  %v2896_v57 = vpack.c.bf16 %v562_v56, %v559_v55 }
  0x21   :  { %v2832_v37 = vpack.c.bf16 %v578_v34, %v575_v33  ;;  %v571_v63 = vld [vmem:[%s3294_s2 + $0x130] sm:$0xff]  ;;  %v123_v34 = vsub.s32 0, %v122_v8 }
  0x22   :  { %498 = vmatmul.mubr.bf16.vlgmr.msra.gmra.mrb[0].mxu1 %v2648_v40 }
  0x23   :  { %429 = vmatpush1.bf16.msra.mxu0 %v2376_v41  ;;  %2035 = vmatpush1.bf16.msra.mxu1 %v2656_v43  ;;  %v2841_v41 = vpack.c.bf16 %v538_v39, %v535_v38  ;;  %v581_v38 = vld [vmem:[%s3296_s4] sm:$0x7]  ;;  %v124_v39 = vrot.slane %v119_v10, %v123_v34 }
  0x24   :  { %430 = vmatprep.subr.bf16.mxu0 %v2377_v44  ;;  %2037 = vmatprep.subr.bf16.mxu1 %v2662_v45  ;;  %v541_v44 = vld [vmem:[%s3294_s2 + $0x40] sm:$0xff] }
  0x25   :  { %505 = vmatprep.mubr.bf16.mxu1 %v2731_v3  ;;  %v2855_v47 = vpack.c.bf16 %v544_v46, %v541_v44  ;;  %v2972_v44 = vrot.slane %v581_v38, %v123_v34 }
  0x27   :  { %431 = vmatpush1.bf16.msra.mxu0 %v2379_v50  ;;  %2039 = vmatpush1.bf16.msra.mxu1 %v2681_v51  ;;  %v553_v50 = vld [vmem:[%s3294_s2 + $0xa0] sm:$0xff] }
  0x28   :  { %432 = vmatprep.subr.bf16.mxu0 %v2380_v52  ;;  %2041 = vmatprep.subr.bf16.mxu1 %v2687_v53  ;;  %v556_v52 = vld [vmem:[%s3294_s2 + $0xb8] sm:$0xff] }
  0x29   :  { %v2882_v54 = vpack.c.bf16 %v556_v52, %v553_v50 }
  0x2a   :  { %506 = vmatmul.mubr.bf16.gmra.mrb[4].mxu1 %v2752_v9 }
  0x2b   :  { %433 = vmatpush1.bf16.msra.mxu0 %v2382_v58  ;;  %2043 = vmatpush1.bf16.msra.mxu1 %v2705_v59  ;;  %v565_v58 = vld [vmem:[%s3294_s2 + $0x100] sm:$0xff] }
  0x2c   :  { %434 = vmatprep.subr.bf16.mxu0 %v2383_v60  ;;  %2045 = vmatprep.subr.bf16.mxu1 %v2711_v61  ;;  %v568_v60 = vld [vmem:[%s3294_s2 + $0x118] sm:$0xff] }
  0x2d   :  { %662 = vmatprep.mubr.f32.mxu1 %v2443_v18  ;;  %v2908_v62 = vpack.c.bf16 %v568_v60, %v565_v58 }
  0x2f   :  { %435 = vmatpush1.bf16.msra.mxu0 %v2385_v0  ;;  %2047 = vmatpush1.bf16.msra.mxu1 %v2734_v4  ;;  %v574_v0 = vld [vmem:[%s3294_s2 + $0x148] sm:$0xff] }
  0x30   :  { %436 = vmatprep.subr.bf16.mxu0 %v2386_v5  ;;  %2049 = vmatprep.subr.bf16.mxu1 %v2740_v6  ;;  %v2920_v1 = vpack.c.bf16 %v574_v0, %v571_v63 }
  0x33   :  { %437 = vmatpush1.bf16.msra.mxu0 %v2388_v12  ;;  %2051 = vmatpush1.bf16.msra.mxu1 %v2765_v13 }
  0x34   :  { %438 = vmatprep.subr.bf16.mxu0 %v2389_v14  ;;  %2053 = vmatprep.subr.bf16.mxu1 %v2771_v15 }
  0x37   :  { %439 = vmatpush1.bf16.msra.mxu0 %v2391_v21  ;;  %2055 = vmatpush1.bf16.msra.mxu1 %v2790_v22 }
  0x38   :  { %440 = vmatprep.subr.bf16.mxu0 %v2394_v23  ;;  %2057 = vmatprep.subr.bf16.mxu1 %v2796_v24 }
  0x3b   :  { %441 = vmatpush1.bf16.msra.mxu0 %v2397_v29  ;;  %2059 = vmatpush1.bf16.msra.mxu1 %v2814_v30 }
  0x3c   :  { %442 = vmatprep.subr.bf16.mxu0 %v2398_v31  ;;  %2061 = vmatprep.subr.bf16.mxu1 %v2820_v32 }
  0x3f   :  { %443 = vmatpush1.bf16.msra.mxu0 %v2400_v35  ;;  %2063 = vmatpush1.bf16.msra.mxu1 %v2832_v37  ;;  %v127_v35 = vsub.s32 1, %v122_v8 }
  0x40   :  { %2064 = vmatprep.subr.bf16.mxu0 %v2444_v42  ;;  %2089 = vmatprep.subr.bf16.mxu1 %v2634_v36 }
  0x41   :  { %v128_v46 = vrot.slane %v119_v10, %v127_v35 }
  0x42   :  { %445 = vmatmul.mubr.bf16.vlgmr.msra.gmra.mrb[0].mxu0 %v2648_v40  ;;  %663 = vmatmul.mubr.f32.vlgmr.msra.gmra.mrb[8].mxu1 %v2443_v18  ;;  %v2869_v40 = vpack.c.bf16 %v550_v49, %v547_v48  ;;  %v2974_v48 = vrot.slane %v581_v38, %v127_v35 }
  0x43   :  { %2066 = vmatpush3.bf16.msra.mxu0 %v2841_v41  ;;  %454 = vmatprep.mubr.bf16.mxu0 %v2731_v3  ;;  %v580_v3 = vld [vmem:[%s3294_s2 + $0x178] sm:$0xff] }
  0x44   :  { %2067 = vmatprep.subr.bf16.mxu0 %v2444_v42  ;;  %2091 = vmatpush1.bf16.msra.mxu1 %v2656_v43  ;;  %v2932_v5 = vpack.c.bf16 %v580_v3, %v577_v2 }
  0x45   :  { %830 = vmatprep.mubr.f32.mxu1 %v2443_v18  ;;  %2093 = vmatprep.subr.bf16.mxu1 %v2662_v45 }
  0x47   :  { %2069 = vmatpush3.bf16.msra.mxu0 %v2855_v47 }
  0x48   :  { %2070 = vmatprep.subr.bf16.mxu0 %v2444_v42  ;;  %2095 = vmatpush1.bf16.msra.mxu1 %v2681_v51 }
  0x49   :  { %2097 = vmatprep.subr.bf16.mxu1 %v2687_v53 }
  0x4a   :  { %455 = vmatmul.mubr.bf16.gmra.mrb[4].mxu0 %v2752_v9  ;;  %v131_v9 = vsub.s32 2, %v122_v8 }
  0x4b   :  { %2072 = vmatpush3.bf16.msra.mxu0 %v2869_v40  ;;  %1819 = vmatprep.mubr.msk.f32.mxu0 %vm2445_vm0, %v2443_v18 }
  0x4c   :  { %2073 = vmatprep.subr.bf16.mxu0 %v2444_v42  ;;  %2099 = vmatpush1.bf16.msra.mxu1 %v2705_v59  ;;  %v132_v14 = vrot.slane %v119_v10, %v131_v9 }
  0x4d   :  { %2101 = vmatprep.subr.bf16.mxu1 %v2711_v61 }
  0x4f   :  { %2075 = vmatpush3.bf16.msra.mxu0 %v2882_v54 }
  0x50   :  { %2076 = vmatprep.subr.bf16.mxu0 %v2444_v42  ;;  %2103 = vmatpush1.bf16.msra.mxu1 %v2734_v4 }
  0x51   :  { %2105 = vmatprep.subr.bf16.mxu1 %v2740_v6 }
  0x53   :  { %2078 = vmatpush3.bf16.msra.mxu0 %v2896_v57 }
  0x54   :  { %2079 = vmatprep.subr.bf16.mxu0 %v2444_v42  ;;  %2107 = vmatpush1.bf16.msra.mxu1 %v2765_v13 }
  0x55   :  { %2109 = vmatprep.subr.bf16.mxu1 %v2771_v15 }
  0x57   :  { %2081 = vmatpush3.bf16.msra.mxu0 %v2908_v62 }
  0x58   :  { %2082 = vmatprep.subr.bf16.mxu0 %v2444_v42  ;;  %2111 = vmatpush1.bf16.msra.mxu1 %v2790_v22 }
  0x59   :  { %2113 = vmatprep.subr.bf16.mxu1 %v2796_v24 }
  0x5b   :  { %2084 = vmatpush3.bf16.msra.mxu0 %v2920_v1 }
  0x5c   :  { %2085 = vmatprep.subr.bf16.mxu0 %v2444_v42  ;;  %2115 = vmatpush1.bf16.msra.mxu1 %v2814_v30 }
  0x5d   :  { %2117 = vmatprep.subr.bf16.mxu1 %v2820_v32 }
  0x5f   :  { %2087 = vmatpush3.bf16.msra.mxu0 %v2932_v5 }
  0x60   :  { %2120 = vmatprep.subr.bf16.mxu0 %v2444_v42  ;;  %2119 = vmatpush1.bf16.msra.mxu1 %v2832_v37 }
  0x61   :  { %2145 = vmatprep.subr.bf16.mxu1 %v2634_v36 }
  0x62   :  { %1820 = vmatmul.mubr.f32.vlgmr.msra.gmra.mrb[8].mxu0 %v2443_v18 }
  0x63   :  { %2122 = vmatpush3.bf16.msra.mxu0 %v2841_v41  ;;  %1854 = vmatprep.mubr.msk.f32.mxu0 %vm2445_vm0, %v2443_v18 }
  0x64   :  { %2123 = vmatprep.subr.bf16.mxu0 %v2444_v42 }
  0x67   :  { %2125 = vmatpush3.bf16.msra.mxu0 %v2855_v47 }
  0x68   :  { %2126 = vmatprep.subr.bf16.mxu0 %v2444_v42 }
  0x6b   :  { %2128 = vmatpush3.bf16.msra.mxu0 %v2869_v40 }
  0x6c   :  { %2129 = vmatprep.subr.bf16.mxu0 %v2444_v42 }
  0x6f   :  { %2131 = vmatpush3.bf16.msra.mxu0 %v2882_v54 }
  0x70   :  { %2132 = vmatprep.subr.bf16.mxu0 %v2444_v42 }
  0x73   :  { %2134 = vmatpush3.bf16.msra.mxu0 %v2896_v57 }
  0x74   :  { %2135 = vmatprep.subr.bf16.mxu0 %v2444_v42 }
  0x77   :  { %2137 = vmatpush3.bf16.msra.mxu0 %v2908_v62 }
  0x78   :  { %2138 = vmatprep.subr.bf16.mxu0 %v2444_v42 }
  0x7b   :  { %2140 = vmatpush3.bf16.msra.mxu0 %v2920_v1 }
  0x7c   :  { %2141 = vmatprep.subr.bf16.mxu0 %v2444_v42 }
  0x7f   :  { %2143 = vmatpush3.bf16.msra.mxu0 %v2932_v5 }
  0x80   :  { %2176 = vmatprep.subr.bf16.mxu0 %v2444_v42 }
  0xf5   :  { %v1656_v11 = vpop.f32.mrb[0].mxu1 }
  0xf6   :  { %v1657_v12 = vpop.f32.mrb[1].mxu1 }
  0xf7   :  { %v1658_v16 = vadd.f32 %v1657_v12, %v1656_v11  ;;  %v1659_v17 = vpop.f32.mrb[2].mxu1 }
  0xf8   :  { %v1660_v19 = vpop.f32.mrb[3].mxu1 }
  0xf9   :  { %v1661_v20 = vadd.f32 %v1660_v19, %v1659_v17 }
  0xfb   :  { %v2963_v21 = vadd.f32 %v1661_v20, %v132_v14 }
  0xfd   :  { %v1662_v23 = vpop.f32.mrb[4].mxu1 }
  0xfe   :  { %v1663_v25 = vpop.f32.mrb[5].mxu1 }
  0xff   :  { %v1664_v26 = vadd.f32 %v1663_v25, %v1662_v23  ;;  %v1665_v27 = vpop.f32.mrb[6].mxu1 }
 0x100   :  { %v1666_v28 = vpop.f32.mrb[7].mxu1 }
 0x101   :  { %v2965_v29 = vadd.f32 %v1664_v26, %v132_v14  ;;  %v1667_v31 = vadd.f32 %v1666_v28, %v1665_v27 }
 0x103   :  { %v2967_v33 = vadd.f32 %v1667_v31, %v132_v14 }
 0x115   :  { %v446_v49 = vpop.f32.mrb[0].mxu0  ;;  %v664_v52 = vpop.f32.mrb[8].mxu1 }
 0x116   :  { %v447_v50 = vadd.f32 %v446_v49, %v124_v39  ;;  %v448_v55 = vpop.f32.mrb[1].mxu0  ;;  %v665_v56 = vadd.f32 %v664_v52, %v2972_v44  ;;  %v666_v60 = vpop.f32.mrb[9].mxu1  ;;  %v2990_v49 = vrot.slane %v581_v38, %v131_v9 }
 0x117   :  { %v449_v58 = vadd.f32 %v448_v55, %v128_v46  ;;  %v450_v63 = vpop.f32.mrb[2].mxu0  ;;  %v667_v0 = vadd.f32 %v666_v60, %v2974_v48  ;;  %v500_v60 = vadd.f32 %v1658_v16, %v132_v14 }
 0x118   :  { %v2978_v2 = vadd.f32 %v450_v63, %v124_v39  ;;  %v452_v3 = vpop.f32.mrb[3].mxu0  ;;  %v739_v7 = vadd.f32 %v665_v56, %v447_v50 }
 0x119   :  { %v2980_v8 = vadd.f32 %v452_v3, %v128_v46  ;;  %v746_v10 = vadd.f32 %v667_v0, %v449_v58 }
 0x11a   :  { %v1629_v11 = vmul.f32 -1.442695, %v739_v7 }
 0x11b   :  { %v1630_v28 = vmul.f32 -1.442695, %v746_v10 }
 0x11c   :  { %2401 = vpow2.f32 %v1629_v11 }
 0x11d   :  { %v456_v12 = vpop.f32.mrb[4].mxu0  ;;  %2403 = vpow2.f32 %v1630_v28 }
 0x11e   :  { %v2982_v17 = vadd.f32 %v456_v12, %v124_v39  ;;  %v458_v19 = vpop.f32.mrb[5].mxu0 }
 0x11f   :  { %v2984_v20 = vadd.f32 %v458_v19, %v128_v46  ;;  %v460_v23 = vpop.f32.mrb[6].mxu0 }
 0x120   :  { %v2986_v25 = vadd.f32 %v460_v23, %v124_v39  ;;  %v462_v26 = vpop.f32.mrb[7].mxu0 }
 0x121   :  { %v2988_v27 = vadd.f32 %v462_v26, %v128_v46 }
 0x126   :  { %v2402_v31 = vpop.eup %2401 }
 0x127   :  { %v743_v34 = vadd.f32 1.0, %v2402_v31  ;;  %v2404_v35 = vpop.eup %2403 }
 0x128   :  { %v750_v50 = vadd.f32 1.0, %v2404_v35 }
 0x129   :  { %2405 = vrcp.f32 %v743_v34 }
 0x12a   :  { %2407 = vrcp.f32 %v750_v50 }
 0x133   :  { %v2406_v58 = vpop.eup %2405 }
 0x134   :  { %v2408_v46 = vpop.eup %2407 }
 0x135   :  { %v735_v52 = vpop.f32.mrb[8].mxu0  ;;  %v756_v0 = vsub.f32 1.0, %v2408_v46  ;;  %v758_v10 = vmul.f32 0.0, %v2408_v46 }
 0x136   :  { %v736_v55 = vadd.f32 %v735_v52, %v2990_v49  ;;  %v1821_v56 = vpop.f32.mrb[9].mxu0 }
 0x138   :  { %v753_v39 = vmul.f32 %v2406_v58, %v736_v55 }
 0x13a   :  { %v754_v63 = vadd.f32 %v753_v39, %v500_v60 }
 0x13c   :  { %2409 = vtanh.f32 %v754_v63 }
 0x146   :  { %v2410_v3 = vpop.eup %2409 }
 0x147   :  { %v757_v7 = vmul.f32 %v2410_v3, %v756_v0  ;;  %v1363_v3 = vld [vmem:[%s3298_s7 + $0x8] sm:$0xff] }
 0x149   :  { %v2993_v11 = vadd.f32 %v758_v10, %v757_v7  ;;  %v1271_v10 = vld [vmem:[%s3297_s5 + $0x10] sm:$0xff] }
 0x14b   :  { %831 = vmatmul.mubr.f32.vlgmr.msra.gmra.mrb[10].mxu1 %v2993_v11  ;;  %1855 = vmatmul.mubr.f32.vlgmr.msra.gmra.mrb[10].mxu0 %v2993_v11 }
 0x14c   :  { %2147 = vmatpush1.bf16.msra.mxu1 %v2656_v43  ;;  %2178 = vmatpush3.bf16.msra.mxu0 %v2841_v41 }
 0x14d   :  { %2149 = vmatprep.subr.bf16.mxu1 %v2662_v45  ;;  %2179 = vmatprep.subr.bf16.mxu0 %v2444_v42 }
 0x14e   :  { %998 = vmatprep.mubr.f32.mxu1 %v2443_v18  ;;  %1889 = vmatprep.mubr.msk.f32.mxu0 %vm2445_vm0, %v2443_v18 }
 0x150   :  { %2151 = vmatpush1.bf16.msra.mxu1 %v2681_v51  ;;  %2181 = vmatpush3.bf16.msra.mxu0 %v2855_v47 }
 0x151   :  { %2153 = vmatprep.subr.bf16.mxu1 %v2687_v53  ;;  %2182 = vmatprep.subr.bf16.mxu0 %v2444_v42 }
 0x154   :  { %2155 = vmatpush1.bf16.msra.mxu1 %v2705_v59  ;;  %2184 = vmatpush3.bf16.msra.mxu0 %v2869_v40 }
 0x155   :  { %2157 = vmatprep.subr.bf16.mxu1 %v2711_v61  ;;  %2185 = vmatprep.subr.bf16.mxu0 %v2444_v42 }
 0x158   :  { %2159 = vmatpush1.bf16.msra.mxu1 %v2734_v4  ;;  %2187 = vmatpush3.bf16.msra.mxu0 %v2882_v54 }
 0x159   :  { %2161 = vmatprep.subr.bf16.mxu1 %v2740_v6  ;;  %2188 = vmatprep.subr.bf16.mxu0 %v2444_v42 }
 0x15c   :  { %2163 = vmatpush1.bf16.msra.mxu1 %v2765_v13  ;;  %2190 = vmatpush3.bf16.msra.mxu0 %v2896_v57 }
 0x15d   :  { %2165 = vmatprep.subr.bf16.mxu1 %v2771_v15  ;;  %2191 = vmatprep.subr.bf16.mxu0 %v2444_v42 }
 0x160   :  { %2167 = vmatpush1.bf16.msra.mxu1 %v2790_v22  ;;  %2193 = vmatpush3.bf16.msra.mxu0 %v2908_v62 }
 0x161   :  { %2169 = vmatprep.subr.bf16.mxu1 %v2796_v24  ;;  %2194 = vmatprep.subr.bf16.mxu0 %v2444_v42 }
 0x164   :  { %2171 = vmatpush1.bf16.msra.mxu1 %v2814_v30  ;;  %2196 = vmatpush3.bf16.msra.mxu0 %v2920_v1 }
 0x165   :  { %2173 = vmatprep.subr.bf16.mxu1 %v2820_v32  ;;  %2197 = vmatprep.subr.bf16.mxu0 %v2444_v42 }
 0x168   :  { %2175 = vmatpush1.bf16.msra.mxu1 %v2832_v37  ;;  %2199 = vmatpush3.bf16.msra.mxu0 %v2932_v5 }
 0x169   :  { %2201 = vmatprep.subr.bf16.mxu1 %v2634_v36  ;;  %2232 = vmatprep.subr.bf16.mxu0 %v2444_v42 }
 0x21e   :  { %v832_v9 = vpop.f32.mrb[10].mxu1  ;;  %v903_v14 = vpop.f32.mrb[10].mxu0 }
 0x21f   :  { %v833_v16 = vadd.f32 %v832_v9, %v2972_v44  ;;  %v834_v38 = vpop.f32.mrb[11].mxu1  ;;  %v1856_v12 = vpop.f32.mrb[11].mxu0  ;;  %v904_v52 = vadd.f32 %v903_v14, %v2990_v49  ;;  %v1364_v9 = vld [vmem:[%s3298_s7 + $0x10] sm:$0xff] }
 0x220   :  { %v835_v19 = vadd.f32 %v834_v38, %v2974_v48  ;;  %v1273_v12 = vld [vmem:[%s3297_s5 + $0x20] sm:$0xff] }
 0x221   :  { %v907_v23 = vadd.f32 %v833_v16, %v2978_v2  ;;  %v1365_v16 = vld [vmem:[%s3298_s7 + $0x18] sm:$0xff] }
 0x222   :  { %v914_v26 = vadd.f32 %v835_v19, %v2980_v8  ;;  %v2284_v38 = vpack.c.bf16 %v1365_v16, %v1364_v9  ;;  %v1274_v19 = vld [vmem:[%s3297_s5 + $0x28] sm:$0xff] }
 0x223   :  { %v1631_v28 = vmul.f32 -1.442695, %v907_v23  ;;  %v1366_v23 = vld [vmem:[%s3298_s7 + $0x20] sm:$0xff]  ;;  %v1462_v16 = vld [vmem:[%s3299_s9 + $0x8] sm:$0xff] }
 0x224   :  { %v1632_v31 = vmul.f32 -1.442695, %v914_v26  ;;  %v2263_v26 = vpack.c.bf16 %v1274_v19, %v1273_v12 }
 0x225   :  { %2411 = vpow2.f32 %v1631_v28  ;;  %v1367_v28 = vld [vmem:[%s3298_s7 + $0x28] sm:$0xff] }
 0x226   :  { %2413 = vpow2.f32 %v1632_v31  ;;  %v2287_v31 = vpack.c.bf16 %v1367_v28, %v1366_v23 }
 0x22f   :  { %v2412_v34 = vpop.eup %2411 }
 0x230   :  { %v911_v36 = vadd.f32 1.0, %v2412_v34  ;;  %v2414_v35 = vpop.eup %2413  ;;  %v1275_v34 = vld [vmem:[%s3297_s5 + $0x30] sm:$0xff] }
 0x231   :  { %v918_v50 = vadd.f32 1.0, %v2414_v35  ;;  %v1368_v35 = vld [vmem:[%s3298_s7 + $0x30] sm:$0xff] }
 0x232   :  { %2415 = vrcp.f32 %v911_v36  ;;  %v1276_v36 = vld [vmem:[%s3297_s5 + $0x38] sm:$0xff] }
 0x233   :  { %2417 = vrcp.f32 %v918_v50  ;;  %v2266_v50 = vpack.c.bf16 %v1276_v36, %v1275_v34  ;;  %v1468_v36 = vld [vmem:[%s3299_s9 + $0x38] sm:$0xff] }
 0x23c   :  { %v2416_v55 = vpop.eup %2415 }
 0x23d   :  { %v921_v56 = vmul.f32 %v2416_v55, %v904_v52  ;;  %v2418_v2 = vpop.eup %2417  ;;  %v1369_v52 = vld [vmem:[%s3298_s7 + $0x38] sm:$0xff] }
 0x23e   :  { %v924_v60 = vsub.f32 1.0, %v2418_v2  ;;  %v926_v63 = vmul.f32 %v2418_v2, %v2993_v11  ;;  %v1272_v11 = vld [vmem:[%s3297_s5 + $0x18] sm:$0xff]  ;;  %v2290_v55 = vpack.c.bf16 %v1369_v52, %v1368_v35  ;;  %v1370_v2 = vld [vmem:[%s3298_s7 + $0x40] sm:$0xff]  ;;  %v1470_v52 = vld [vmem:[%s3299_s9 + $0x48] sm:$0xff] }
 0x23f   :  { %v922_v58 = vadd.f32 %v921_v56, %v2963_v21  ;;  %v2260_v14 = vpack.c.bf16 %v1272_v11, %v1271_v10  ;;  %v1277_v56 = vld [vmem:[%s3297_s5 + $0x40] sm:$0xff] }
 0x241   :  { %2419 = vtanh.f32 %v922_v58  ;;  %v1278_v58 = vld [vmem:[%s3297_s5 + $0x48] sm:$0xff] }
 0x24b   :  { %v2420_v8 = vpop.eup %2419 }
 0x24c   :  { %v925_v39 = vmul.f32 %v2420_v8, %v924_v60  ;;  %v2269_v60 = vpack.c.bf16 %v1278_v58, %v1277_v56  ;;  %v1371_v8 = vld [vmem:[%s3298_s7 + $0x48] sm:$0xff]  ;;  %v1471_v56 = vld [vmem:[%s3299_s9 + $0x50] sm:$0xff]  ;;  %v1472_v58 = vld [vmem:[%s3299_s9 + $0x58] sm:$0xff] }
 0x24e   :  { %v3039_v46 = vadd.f32 %v926_v63, %v925_v39  ;;  %v2293_v39 = vpack.c.bf16 %v1371_v8, %v1370_v2  ;;  %v1279_v63 = vld [vmem:[%s3297_s5 + $0x50] sm:$0xff]  ;;  %v2320_v2 = vpack.c.bf16 %v1472_v58, %v1471_v56  ;;  %v1474_v8 = vld [vmem:[%s3299_s9 + $0x68] sm:$0xff] }
 0x250   :  { %999 = vmatmul.mubr.f32.vlgmr.msra.gmra.mrb[12].mxu1 %v3039_v46  ;;  %1890 = vmatmul.mubr.f32.vlgmr.msra.gmra.mrb[12].mxu0 %v3039_v46 }
 0x251   :  { %2203 = vmatpush1.bf16.msra.mxu1 %v2656_v43  ;;  %2234 = vmatpush3.bf16.msra.mxu0 %v2841_v41 }
 0x252   :  { %2205 = vmatprep.subr.bf16.mxu1 %v2662_v45  ;;  %2235 = vmatprep.subr.bf16.mxu0 %v2444_v42 }
 0x253   :  { %1166 = vmatprep.mubr.f32.mxu1 %v2443_v18  ;;  %1924 = vmatprep.mubr.msk.f32.mxu0 %vm2445_vm0, %v2443_v18 }
 0x255   :  { %2207 = vmatpush1.bf16.msra.mxu1 %v2681_v51  ;;  %2237 = vmatpush3.bf16.msra.mxu0 %v2855_v47 }
 0x256   :  { %2209 = vmatprep.subr.bf16.mxu1 %v2687_v53  ;;  %2238 = vmatprep.subr.bf16.mxu0 %v2444_v42 }
 0x259   :  { %2211 = vmatpush1.bf16.msra.mxu1 %v2705_v59  ;;  %2240 = vmatpush3.bf16.msra.mxu0 %v2869_v40 }
 0x25a   :  { %2213 = vmatprep.subr.bf16.mxu1 %v2711_v61  ;;  %2241 = vmatprep.subr.bf16.mxu0 %v2444_v42 }
 0x25d   :  { %2215 = vmatpush1.bf16.msra.mxu1 %v2734_v4  ;;  %2243 = vmatpush3.bf16.msra.mxu0 %v2882_v54 }
 0x25e   :  { %2217 = vmatprep.subr.bf16.mxu1 %v2740_v6  ;;  %2244 = vmatprep.subr.bf16.mxu0 %v2444_v42 }
 0x261   :  { %2219 = vmatpush1.bf16.msra.mxu1 %v2765_v13  ;;  %2246 = vmatpush3.bf16.msra.mxu0 %v2896_v57 }
 0x262   :  { %2221 = vmatprep.subr.bf16.mxu1 %v2771_v15  ;;  %2247 = vmatprep.subr.bf16.mxu0 %v2444_v42 }
 0x265   :  { %2223 = vmatpush1.bf16.msra.mxu1 %v2790_v22  ;;  %2249 = vmatpush3.bf16.msra.mxu0 %v2908_v62 }
 0x266   :  { %2225 = vmatprep.subr.bf16.mxu1 %v2796_v24  ;;  %2250 = vmatprep.subr.bf16.mxu0 %v2444_v42 }
 0x269   :  { %2227 = vmatpush1.bf16.msra.mxu1 %v2814_v30  ;;  %2252 = vmatpush3.bf16.msra.mxu0 %v2920_v1 }
 0x26a   :  { %2229 = vmatprep.subr.bf16.mxu1 %v2820_v32  ;;  %2253 = vmatprep.subr.bf16.mxu0 %v2444_v42 }
 0x26d   :  { %2231 = vmatpush1.bf16.msra.mxu1 %v2832_v37  ;;  %2255 = vmatpush3.bf16.msra.mxu0 %v2932_v5 }
 0x26e   :  { %2256 = vmatprep.subr.bf16.mxu1 %v2444_v42  ;;  %2280 = vmatprep.subr.bf16.mxu0 %v2444_v42 }
 0x323   :  { %v1000_v43 = vpop.f32.mrb[12].mxu1  ;;  %v1071_v45 = vpop.f32.mrb[12].mxu0 }
 0x324   :  { %v1001_v51 = vadd.f32 %v1000_v43, %v2972_v44  ;;  %v1002_v53 = vpop.f32.mrb[13].mxu1  ;;  %v1891_v59 = vpop.f32.mrb[13].mxu0  ;;  %v1072_v37 = vadd.f32 %v1071_v45, %v2990_v49  ;;  %v1372_v43 = vld [vmem:[%s3298_s7 + $0x50] sm:$0xff] }
 0x325   :  { %v1003_v61 = vadd.f32 %v1002_v53, %v2974_v48  ;;  %v1281_v59 = vld [vmem:[%s3297_s5 + $0x60] sm:$0xff] }
 0x326   :  { %v1075_v4 = vadd.f32 %v1001_v51, %v2982_v17  ;;  %v1270_v17 = vld [vmem:[%s3297_s5 + $0x8] sm:$0xff]  ;;  %v1373_v51 = vld [vmem:[%s3298_s7 + $0x58] sm:$0xff] }
 0x327   :  { %v1082_v6 = vadd.f32 %v1003_v61, %v2984_v20  ;;  %v1362_v20 = vld [vmem:[%s3298_s7] sm:$0xff]  ;;  %v2296_v53 = vpack.c.bf16 %v1373_v51, %v1372_v43  ;;  %v1282_v61 = vld [vmem:[%s3297_s5 + $0x68] sm:$0xff] }
 0x328   :  { %v1633_v13 = vmul.f32 -1.442695, %v1075_v4  ;;  %v2281_v7 = vpack.c.bf16 %v1363_v3, %v1362_v20  ;;  %v1374_v4 = vld [vmem:[%s3298_s7 + $0x60] sm:$0xff] }
 0x329   :  { %v1634_v15 = vmul.f32 -1.442695, %v1082_v6  ;;  %v1375_v6 = vld [vmem:[%s3298_s7 + $0x68] sm:$0xff]  ;;  %v1638_v51 = vld [vmem:[%s3301_s8] ss:$0 sm:$0xff] }
 0x32a   :  { %2421 = vpow2.f32 %v1633_v13  ;;  %v2275_v13 = vpack.c.bf16 %v1282_v61, %v1281_v59 }
 0x32b   :  { %2423 = vpow2.f32 %v1634_v15  ;;  %v2299_v15 = vpack.c.bf16 %v1375_v6, %v1374_v4 }
 0x334   :  { %v2422_v22 = vpop.eup %2421 }
 0x335   :  { %v1079_v24 = vadd.f32 1.0, %v2422_v22  ;;  %v2424_v30 = vpop.eup %2423  ;;  %v1283_v22 = vld [vmem:[%s3297_s5 + $0x70] sm:$0xff] }
 0x336   :  { %v1086_v32 = vadd.f32 1.0, %v2424_v30  ;;  %v1376_v30 = vld [vmem:[%s3298_s7 + $0x70] sm:$0xff] }
 0x337   :  { %2425 = vrcp.f32 %v1079_v24  ;;  %v1284_v24 = vld [vmem:[%s3297_s5 + $0x78] sm:$0xff] }
 0x338   :  { %2427 = vrcp.f32 %v1086_v32  ;;  %v1377_v32 = vld [vmem:[%s3298_s7 + $0x78] sm:$0xff] }
 0x341   :  { %v2426_v41 = vpop.eup %2425 }
 0x342   :  { %v1089_v47 = vmul.f32 %v2426_v41, %v1072_v37  ;;  %v2428_v54 = vpop.eup %2427  ;;  %v2278_v37 = vpack.c.bf16 %v1284_v24, %v1283_v22  ;;  %v2302_v41 = vpack.c.bf16 %v1377_v32, %v1376_v30  ;;  %v1455_v22 = vld [vmem:[%s3304_s11] sm:$0xff] }
 0x343   :  { %v1092_v57 = vsub.f32 1.0, %v2428_v54  ;;  %v1094_v5 = vmul.f32 %v2428_v54, %v3039_v46  ;;  %v1280_v46 = vld [vmem:[%s3297_s5 + $0x58] sm:$0xff] }
 0x344   :  { %v1090_v40 = vadd.f32 %v1089_v47, %v2965_v29  ;;  %v1269_v29 = vld [vmem:[%s3297_s5] sm:$0xff]  ;;  %v2272_v45 = vpack.c.bf16 %v1280_v46, %v1279_v63  ;;  %v1475_v63 = vld [vmem:[%s3299_s9 + $0x70] sm:$0xff]  ;;  %v1476_v46 = vld [vmem:[%s3299_s9 + $0x78] sm:$0xff] }
 0x345   :  { %v2257_v0 = vpack.c.bf16 %v1270_v17, %v1269_v29  ;;  %v2326_v43 = vpack.c.bf16 %v1476_v46, %v1475_v63 }
 0x346   :  { %2429 = vtanh.f32 %v1090_v40 }
 0x350   :  { %v2430_v62 = vpop.eup %2429 }
 0x351   :  { %v1093_v1 = vmul.f32 %v2430_v62, %v1092_v57 }
 0x353   :  { %v3085_v21 = vadd.f32 %v1094_v5, %v1093_v1 }
 0x355   :  { %1167 = vmatmul.mubr.f32.vlgmr.msra.gmra.mrb[14].mxu1 %v3085_v21  ;;  %1925 = vmatmul.mubr.f32.vlgmr.msra.gmra.mrb[14].mxu0 %v3085_v21 }
 0x356   :  { %1959 = vmatprep.mubr.msk.f32.mxu1 %vm2445_vm0, %v2443_v18  ;;  %1994 = vmatprep.mubr.msk.f32.mxu0 %vm2445_vm0, %v2443_v18 }
 0x357   :  { %2258 = vmatpush3.bf16.msra.mxu1 %v2257_v0  ;;  %2282 = vmatpush3.bf16.msra.mxu0 %v2281_v7 }
 0x358   :  { %2259 = vmatprep.subr.bf16.mxu1 %v2444_v42  ;;  %2283 = vmatprep.subr.bf16.mxu0 %v2444_v42 }
 0x35b   :  { %2261 = vmatpush3.bf16.msra.mxu1 %v2260_v14  ;;  %2285 = vmatpush3.bf16.msra.mxu0 %v2284_v38 }
 0x35c   :  { %2262 = vmatprep.subr.bf16.mxu1 %v2444_v42  ;;  %2286 = vmatprep.subr.bf16.mxu0 %v2444_v42 }
 0x35f   :  { %2264 = vmatpush3.bf16.msra.mxu1 %v2263_v26  ;;  %2288 = vmatpush3.bf16.msra.mxu0 %v2287_v31  ;;  %v1464_v26 = vld [vmem:[%s3299_s9 + $0x18] sm:$0xff]  ;;  %v1466_v31 = vld [vmem:[%s3299_s9 + $0x28] sm:$0xff] }
 0x360   :  { %2265 = vmatprep.subr.bf16.mxu1 %v2444_v42  ;;  %2289 = vmatprep.subr.bf16.mxu0 %v2444_v42 }
 0x363   :  { %2267 = vmatpush3.bf16.msra.mxu1 %v2266_v50  ;;  %2291 = vmatpush3.bf16.msra.mxu0 %v2290_v55  ;;  %v1469_v50 = vld [vmem:[%s3299_s9 + $0x40] sm:$0xff] }
 0x364   :  { %2268 = vmatprep.subr.bf16.mxu1 %v2444_v42  ;;  %2292 = vmatprep.subr.bf16.mxu0 %v2444_v42  ;;  %v2317_v55 = vpack.c.bf16 %v1470_v52, %v1469_v50 }
 0x367   :  { %2270 = vmatpush3.bf16.msra.mxu1 %v2269_v60  ;;  %2294 = vmatpush3.bf16.msra.mxu0 %v2293_v39  ;;  %v1473_v60 = vld [vmem:[%s3299_s9 + $0x60] sm:$0xff] }
 0x368   :  { %2271 = vmatprep.subr.bf16.mxu1 %v2444_v42  ;;  %2295 = vmatprep.subr.bf16.mxu0 %v2444_v42  ;;  %v2323_v39 = vpack.c.bf16 %v1474_v8, %v1473_v60 }
 0x36b   :  { %2273 = vmatpush3.bf16.msra.mxu1 %v2272_v45  ;;  %2297 = vmatpush3.bf16.msra.mxu0 %v2296_v53  ;;  %v1637_v45 = vld [vmem:[%s3300_s6] ss:$0 sm:$0xff] }
 0x36c   :  { %2274 = vmatprep.subr.bf16.mxu1 %v2444_v42  ;;  %2298 = vmatprep.subr.bf16.mxu0 %v2444_v42 }
 0x36f   :  { %2276 = vmatpush3.bf16.msra.mxu1 %v2275_v13  ;;  %2300 = vmatpush3.bf16.msra.mxu0 %v2299_v15 }
 0x370   :  { %2277 = vmatprep.subr.bf16.mxu1 %v2444_v42  ;;  %2301 = vmatprep.subr.bf16.mxu0 %v2444_v42 }
 0x373   :  { %2279 = vmatpush3.bf16.msra.mxu1 %v2278_v37  ;;  %2303 = vmatpush3.bf16.msra.mxu0 %v2302_v41  ;;  %v1639_v37 = vld [vmem:[%s3306_s10] ss:$0 sm:$0xff] }
 0x374   :  { %2304 = vmatprep.subr.bf16.mxu1 %v2444_v42 }
 0x428   :  { %v1168_v47 = vpop.f32.mrb[14].mxu1  ;;  %v1239_v40 = vpop.f32.mrb[14].mxu0 }
 0x429   :  { %v1169_v54 = vadd.f32 %v1168_v47, %v2972_v44  ;;  %v1170_v57 = vpop.f32.mrb[15].mxu1  ;;  %v1926_v62 = vpop.f32.mrb[15].mxu0  ;;  %v1240_v11 = vadd.f32 %v1239_v40, %v2990_v49 }
 0x42a   :  { %v1171_v1 = vadd.f32 %v1170_v57, %v2974_v48 }
 0x42b   :  { %v1243_v5 = vadd.f32 %v1169_v54, %v2986_v25 }
 0x42c   :  { %v1250_v29 = vadd.f32 %v1171_v1, %v2988_v27  ;;  %v1461_v27 = vld [vmem:[%s3299_s9] sm:$0xff] }
 0x42d   :  { %v1635_v17 = vmul.f32 -1.442695, %v1243_v5  ;;  %v2305_v19 = vpack.c.bf16 %v1462_v16, %v1461_v27 }
 0x42e   :  { %v1636_v20 = vmul.f32 -1.442695, %v1250_v29 }
 0x42f   :  { %2431 = vpow2.f32 %v1635_v17 }
 0x430   :  { %2433 = vpow2.f32 %v1636_v20 }
 0x439   :  { %v2432_v0 = vpop.eup %2431 }
 0x43a   :  { %v1247_v3 = vadd.f32 1.0, %v2432_v0  ;;  %v2434_v7 = vpop.eup %2433 }
 0x43b   :  { %v1254_v10 = vadd.f32 1.0, %v2434_v7 }
 0x43c   :  { %2435 = vrcp.f32 %v1247_v3 }
 0x43d   :  { %2437 = vrcp.f32 %v1254_v10 }
 0x446   :  { %v2436_v44 = vpop.eup %2435 }
 0x447   :  { %v1257_v9 = vmul.f32 %v2436_v44, %v1240_v11  ;;  %v2438_v25 = vpop.eup %2437 }
 0x448   :  { %v1260_v14 = vsub.f32 1.0, %v2438_v25  ;;  %v1262_v49 = vmul.f32 %v2438_v25, %v3085_v21  ;;  %v1465_v21 = vld [vmem:[%s3299_s9 + $0x20] sm:$0xff] }
 0x449   :  { %v1258_v48 = vadd.f32 %v1257_v9, %v2967_v33  ;;  %v1463_v33 = vld [vmem:[%s3299_s9 + $0x10] sm:$0xff]  ;;  %v2311_v34 = vpack.c.bf16 %v1466_v31, %v1465_v21 }
 0x44a   :  { %v2308_v28 = vpack.c.bf16 %v1464_v26, %v1463_v33 }
 0x44b   :  { %2439 = vtanh.f32 %v1258_v48 }
 0x455   :  { %v2440_v38 = vpop.eup %2439 }
 0x456   :  { %v1261_v12 = vmul.f32 %v2440_v38, %v1260_v14 }
 0x458   :  { %v1263_v23 = vadd.f32 %v1262_v49, %v1261_v12 }
 0x45a   :  { %1960 = vmatmul.mubr.f32.vlgmr.msra.gmra.mrb[16].mxu1 %v1263_v23  ;;  %1995 = vmatmul.mubr.f32.vlgmr.msra.gmra.mrb[16].mxu0 %v1263_v23 }
 0x45b   :  { %2306 = vmatpush3.bf16.msra.mxu1 %v2305_v19  ;;  %2029 = vmatprep.mubr.msk.f32.mxu1 %vm2445_vm0, %v2443_v18  ;;  %v1467_v18 = vld [vmem:[%s3299_s9 + $0x30] sm:$0xff] }
 0x45c   :  { %2307 = vmatprep.subr.bf16.mxu1 %v2444_v42  ;;  %v2314_v35 = vpack.c.bf16 %v1468_v36, %v1467_v18 }
 0x45f   :  { %2309 = vmatpush3.bf16.msra.mxu1 %v2308_v28 }
 0x460   :  { %2310 = vmatprep.subr.bf16.mxu1 %v2444_v42 }
 0x463   :  { %2312 = vmatpush3.bf16.msra.mxu1 %v2311_v34 }
 0x464   :  { %2313 = vmatprep.subr.bf16.mxu1 %v2444_v42 }
 0x467   :  { %2315 = vmatpush3.bf16.msra.mxu1 %v2314_v35 }
 0x468   :  { %2316 = vmatprep.subr.bf16.mxu1 %v2444_v42 }
 0x46b   :  { %2318 = vmatpush3.bf16.msra.mxu1 %v2317_v55 }
 0x46c   :  { %2319 = vmatprep.subr.bf16.mxu1 %v2444_v42 }
 0x46f   :  { %2321 = vmatpush3.bf16.msra.mxu1 %v2320_v2 }
 0x470   :  { %2322 = vmatprep.subr.bf16.mxu1 %v2444_v42 }
 0x473   :  { %2324 = vmatpush3.bf16.msra.mxu1 %v2323_v39 }
 0x474   :  { %2325 = vmatprep.subr.bf16.mxu1 %v2444_v42 }
 0x477   :  { %2327 = vmatpush3.bf16.msra.mxu1 %v2326_v43 }
 0x52d   :  { %v1358_v53 = vpop.f32.mrb[16].mxu1  ;;  %v1451_v59 = vpop.f32.mrb[16].mxu0 }
 0x52e   :  { %v1359_v61 = vadd.f32 %v1637_v45, %v1358_v53  ;;  %v1452_v4 = vadd.f32 %v1638_v51, %v1451_v59  ;;  %v1961_v6 = vpop.f32.mrb[17].mxu1  ;;  %v1996_v13 = vpop.f32.mrb[17].mxu0 }
 0x530   :  { %1555 = vst [vmem:[%s3302_s13] sm:$0xff] %v1359_v61  ;;  %v1456_v42 = vmul.f32 0.5, %v1452_v4  ;;  %1556 = vst [vmem:[%s3303_s14] sm:$0xff] %v1452_v4 }
 0x532   :  { %v1457_v15 = vmul.f32 1.442695, %v1456_v42 }
 0x534   :  { %2441 = vpow2.f32 %v1457_v15 }
 0x53e   :  { %v2442_v24 = vpop.eup %2441 }
 0x53f   :  { %v1459_v30 = vmul.f32 %v2442_v24, %v1455_v22 }
 0x541   :  { %v1460_v32 = vadd.f32 %v1459_v30, %v1359_v61 }
 0x543   :  { %2030 = vmatmul.mubr.f32.vlgmr.msra.gmra.mrb[18].mxu1 %v1460_v32  ;;  %1557 = vst [vmem:[%s3305_s15] sm:$0xff] %v1460_v32 }
 0x616   :  { %v1550_v41 = vpop.f32.mrb[18].mxu1 }
 0x617   :  { %v1551_v47 = vadd.f32 %v1639_v37, %v1550_v41  ;;  %v2031_v40 = vpop.f32.mrb[19].mxu1 }
 0x619   :  { %1554 = vst [vmem:[%s3307_s12] sm:$0xff] %v1551_v47 }

</bundles_post_ra>
